<compile_context>
chip_gen: v7x
topology: tpu7x:2x2x1
jax: 0.10.0
libtpu: 0.0.40
codegen_flags: <defaults>
</compile_context>

<pallas_src>
import functools

import jax
import jax.numpy as jnp
from jax.experimental import pallas as pl
from jax.experimental.pallas import tpu as pltpu

LAYER_SIZES = [784, 520, 320, 240, 120, 10]
IN_FEATURES = LAYER_SIZES[0]
NUM_CLASSES = LAYER_SIZES[-1]


def _round_up(n, m):
    return ((n + m - 1) // m) * m


# Feature widths used inside the kernel: input stays 784 (full-dim block, no padding);
# hidden/output widths are padded to 128-lane multiples: [784, 640, 384, 256, 128, 128].
PAD_SIZES = [IN_FEATURES] + [_round_up(s, 128) for s in LAYER_SIZES[1:]]
OUT_PAD = PAD_SIZES[-1]

# Fixed tile menu (review: don't derive an arbitrary tile from the batch size).
_TILE_CHOICES = (8, 16, 32, 64, 128, 256, 512)


def _pick_tile(batch_padded):
    for t in _TILE_CHOICES:
        if t >= batch_padded:
            return t
    return _TILE_CHOICES[-1]


def mlp_kernel(x_ref,
               w1_ref, b1_ref,
               w2_ref, b2_ref,
               w3_ref, b3_ref,
               w4_ref, b4_ref,
               w5_ref, b5_ref,
               o_ref):
    """Fused 5x (relu(h @ W + b)); bf16 MXU matmuls with f32 accumulation."""
    h = x_ref[...].astype(jnp.bfloat16)          # cast once, in-kernel (no extra HBM pass)
    layers = ((w1_ref, b1_ref), (w2_ref, b2_ref), (w3_ref, b3_ref),
              (w4_ref, b4_ref), (w5_ref, b5_ref))
    for idx, (w_ref, b_ref) in enumerate(layers):
        acc = jnp.dot(h, w_ref[...], preferred_element_type=jnp.float32)
        acc = jnp.maximum(acc + b_ref[...], 0.0)  # bias + ReLU on the f32 accumulator
        if idx < len(layers) - 1:
            h = acc.astype(jnp.bfloat16)          # next MXU pass in bf16
        else:
            o_ref[...] = acc.astype(o_ref.dtype)  # lane-dense (tile, 128) bf16 store


def prepare_params(params):
    """One-time prep (call at model init, NOT per forward): pad (in,out) weights /
    (1,out) biases to the kernel's padded widths; weights -> bf16, biases stay f32."""
    assert len(params) == len(LAYER_SIZES) - 1
    padded = []
    for i, (w_t, b_row) in enumerate(params):
        fan_in, fan_out = LAYER_SIZES[i], LAYER_SIZES[i + 1]
        assert w_t.shape == (fan_in, fan_out), (w_t.shape, (fan_in, fan_out))
        assert b_row.shape == (1, fan_out), (b_row.shape, (1, fan_out))
        in_p, out_p = PAD_SIZES[i], PAD_SIZES[i + 1]
        w_pad = jnp.pad(w_t, ((0, in_p - fan_in), (0, out_p - fan_out)))
        b_pad = jnp.pad(b_row, ((0, 0), (0, out_p - fan_out)))
        padded.append((w_pad.astype(jnp.bfloat16), b_pad.astype(jnp.float32)))
    return tuple(padded)


@functools.partial(jax.jit, static_argnames=("tile_b",))
def _forward_impl(x, padded_params, *, tile_b):
    x2d = x.reshape(-1, IN_FEATURES).astype(jnp.float32)  # == x.view(-1, 784)
    batch = x2d.shape[0]
    b_pad = _round_up(batch, 8)
    if b_pad != batch:                                     # tiny pad, usually a no-op
        x2d = jnp.pad(x2d, ((0, b_pad - batch), (0, 0)))

    grid = (pl.cdiv(b_pad, tile_b),)

    in_specs = [pl.BlockSpec((tile_b, IN_FEATURES), lambda i: (i, 0))]
    flat_args = [x2d]
    for w_pad, b_pad_arr in padded_params:
        # Constant index_maps -> weights/biases stay resident in VMEM across grid steps.
        in_specs.append(pl.BlockSpec(w_pad.shape, lambda i: (0, 0)))
        in_specs.append(pl.BlockSpec(b_pad_arr.shape, lambda i: (0, 0)))
        flat_args.extend([w_pad, b_pad_arr])

    out_pad = pl.pallas_call(
        mlp_kernel,
        out_shape=jax.ShapeDtypeStruct((b_pad, OUT_PAD), jnp.bfloat16),
        grid=grid,
        in_specs=in_specs,
        out_specs=pl.BlockSpec((tile_b, OUT_PAD), lambda i: (i, 0)),
        compiler_params=pltpu.CompilerParams(
            dimension_semantics=("parallel",),
        ),
    )(*flat_args)

    # Slice off padded batch rows / padded lanes; upcast the 10 real classes to f32.
    return out_pad[:batch, :NUM_CLASSES].astype(jnp.float32)


def mlp_forward(x, padded_params):
    """x: (B, 1, 28, 28) or (B, 784) float array. padded_params: prepare_params(...)."""
    total = 1
    for d in x.shape:
        total *= int(d)
    batch = total // IN_FEATURES
    tile = _pick_tile(_round_up(batch, 8))
    return _forward_impl(x, padded_params, tile_b=tile)


def mlp_reference(x, params):
    """Pure-JAX f32 reference of the PyTorch forward()."""
    h = x.reshape(-1, IN_FEATURES).astype(jnp.float32)
    for w_t, b_row in params:
        h = jnp.maximum(h @ w_t + b_row, 0.0)
    return h


def init_params(key):
    """Deterministic init mimicking torch.nn.Linear default U[-1/sqrt(fan_in), +]."""
    params = []
    for i in range(len(LAYER_SIZES) - 1):
        fan_in, fan_out = LAYER_SIZES[i], LAYER_SIZES[i + 1]
        key, kw, kb = jax.random.split(key, 3)
        bound = 1.0 / jnp.sqrt(jnp.float32(fan_in))
        # PyTorch stores (out, in); we keep the transposed (in, out) layout.
        w_t = jax.random.uniform(kw, (fan_in, fan_out), jnp.float32, -bound, bound)
        b_row = jax.random.uniform(kb, (1, fan_out), jnp.float32, -bound, bound)
        params.append((w_t, b_row))
    return params


if __name__ == "__main__":
    key = jax.random.PRNGKey(0)
    key, kx = jax.random.split(key)

    # Small batch of MNIST-shaped inputs (NCHW), consistent with x.view(-1, 784).
    x = jax.random.normal(kx, (2, 1, 28, 28), dtype=jnp.float32)
    params = init_params(key)

    # One-time weight prep (hoisted out of the forward path per the perf review).
    padded_params = prepare_params(params)

    out = mlp_forward(x, padded_params)
    jax.block_until_ready(out)

    assert out.shape == (2, 10), out.shape
    assert out.dtype == jnp.float32
    assert bool(jnp.all(out >= 0.0))  # final ReLU

    # bf16 weights/activations with f32 accumulation: check against the f32 reference.
    ref = mlp_reference(x, params)
    assert bool(jnp.allclose(out, ref, rtol=5e-2, atol=5e-2)), (
        float(jnp.max(jnp.abs(out - ref))))

    print("KERNEL_OK")
</pallas_src>

<mosaic_0001>
module attributes {stable_mosaic.version = 11 : i64} {
  func.func @mlp_kernel(%arg0: i32, %arg1: memref<8x784xf32, #tpu.memory_space<vmem>>, %arg2: memref<784x640xbf16, #tpu.memory_space<vmem>>, %arg3: memref<1x640xf32, #tpu.memory_space<vmem>>, %arg4: memref<640x384xbf16, #tpu.memory_space<vmem>>, %arg5: memref<1x384xf32, #tpu.memory_space<vmem>>, %arg6: memref<384x256xbf16, #tpu.memory_space<vmem>>, %arg7: memref<1x256xf32, #tpu.memory_space<vmem>>, %arg8: memref<256x128xbf16, #tpu.memory_space<vmem>>, %arg9: memref<1x128xf32, #tpu.memory_space<vmem>>, %arg10: memref<128x128xbf16, #tpu.memory_space<vmem>>, %arg11: memref<1x128xf32, #tpu.memory_space<vmem>>, %arg12: memref<8x128xbf16, #tpu.memory_space<vmem>>) attributes {dimension_semantics = [#tpu.dimension_semantics<parallel>], iteration_bounds = array<i64: 1>, scalar_prefetch = 0 : i64, scratch_operands = 0 : i64, tpu.core_type = #tpu.core_type<tc>, window_params = [{transform_indices = @transform_0, window_bounds = array<i64: 8, 784>}, {pipeline_mode = #tpu.pipeline_mode<synchronous>, transform_indices = @transform_1, window_bounds = array<i64: 784, 640>}, {pipeline_mode = #tpu.pipeline_mode<synchronous>, transform_indices = @transform_2, window_bounds = array<i64: 1, 640>}, {pipeline_mode = #tpu.pipeline_mode<synchronous>, transform_indices = @transform_3, window_bounds = array<i64: 640, 384>}, {pipeline_mode = #tpu.pipeline_mode<synchronous>, transform_indices = @transform_4, window_bounds = array<i64: 1, 384>}, {pipeline_mode = #tpu.pipeline_mode<synchronous>, transform_indices = @transform_5, window_bounds = array<i64: 384, 256>}, {pipeline_mode = #tpu.pipeline_mode<synchronous>, transform_indices = @transform_6, window_bounds = array<i64: 1, 256>}, {pipeline_mode = #tpu.pipeline_mode<synchronous>, transform_indices = @transform_7, window_bounds = array<i64: 256, 128>}, {pipeline_mode = #tpu.pipeline_mode<synchronous>, transform_indices = @transform_8, window_bounds = array<i64: 1, 128>}, {pipeline_mode = #tpu.pipeline_mode<synchronous>, transform_indices = @transform_9, window_bounds = array<i64: 128, 128>}, {pipeline_mode = #tpu.pipeline_mode<synchronous>, transform_indices = @transform_10, window_bounds = array<i64: 1, 128>}, {transform_indices = @transform_11, window_bounds = array<i64: 8, 128>}]} {
    %c0 = arith.constant 0 : index
    %c0_0 = arith.constant 0 : index
    %0 = vector.load %arg1[%c0, %c0_0] : memref<8x784xf32, #tpu.memory_space<vmem>>, vector<8x784xf32>
    %1 = arith.truncf %0 : vector<8x784xf32> to vector<8x784xbf16>
    %c0_1 = arith.constant 0 : index
    %c0_2 = arith.constant 0 : index
    %2 = vector.load %arg2[%c0_1, %c0_2] : memref<784x640xbf16, #tpu.memory_space<vmem>>, vector<784x640xbf16>
    %cst = arith.constant dense<0.000000e+00> : vector<8x640xf32>
    %3 = tpu.matmul %1, %2, %cst {dimension_numbers = #tpu.dot_dimension_numbers<[1], [0], [0], [1], [0, 0, 1, 1], [], []>} : vector<8x784xbf16>, vector<784x640xbf16>, vector<8x640xf32> -> vector<8x640xf32>
    %c0_3 = arith.constant 0 : index
    %c0_4 = arith.constant 0 : index
    %4 = vector.load %arg3[%c0_3, %c0_4] : memref<1x640xf32, #tpu.memory_space<vmem>>, vector<1x640xf32>
    %5 = vector.broadcast %4 : vector<1x640xf32> to vector<8x640xf32>
    %6 = arith.addf %3, %5 : vector<8x640xf32>
    %cst_5 = arith.constant 0.000000e+00 : f32
    %7 = vector.broadcast %cst_5 : f32 to vector<8x640xf32>
    %8 = arith.maximumf %6, %7 : vector<8x640xf32>
    %9 = arith.truncf %8 : vector<8x640xf32> to vector<8x640xbf16>
    %c0_6 = arith.constant 0 : index
    %c0_7 = arith.constant 0 : index
    %10 = vector.load %arg4[%c0_6, %c0_7] : memref<640x384xbf16, #tpu.memory_space<vmem>>, vector<640x384xbf16>
    %cst_8 = arith.constant dense<0.000000e+00> : vector<8x384xf32>
    %11 = tpu.matmul %9, %10, %cst_8 {dimension_numbers = #tpu.dot_dimension_numbers<[1], [0], [0], [1], [0, 0, 1, 1], [], []>} : vector<8x640xbf16>, vector<640x384xbf16>, vector<8x384xf32> -> vector<8x384xf32>
    %c0_9 = arith.constant 0 : index
    %c0_10 = arith.constant 0 : index
    %12 = vector.load %arg5[%c0_9, %c0_10] : memref<1x384xf32, #tpu.memory_space<vmem>>, vector<1x384xf32>
    %13 = vector.broadcast %12 : vector<1x384xf32> to vector<8x384xf32>
    %14 = arith.addf %11, %13 : vector<8x384xf32>
    %cst_11 = arith.constant 0.000000e+00 : f32
    %15 = vector.broadcast %cst_11 : f32 to vector<8x384xf32>
    %16 = arith.maximumf %14, %15 : vector<8x384xf32>
    %17 = arith.truncf %16 : vector<8x384xf32> to vector<8x384xbf16>
    %c0_12 = arith.constant 0 : index
    %c0_13 = arith.constant 0 : index
    %18 = vector.load %arg6[%c0_12, %c0_13] : memref<384x256xbf16, #tpu.memory_space<vmem>>, vector<384x256xbf16>
    %cst_14 = arith.constant dense<0.000000e+00> : vector<8x256xf32>
    %19 = tpu.matmul %17, %18, %cst_14 {dimension_numbers = #tpu.dot_dimension_numbers<[1], [0], [0], [1], [0, 0, 1, 1], [], []>} : vector<8x384xbf16>, vector<384x256xbf16>, vector<8x256xf32> -> vector<8x256xf32>
    %c0_15 = arith.constant 0 : index
    %c0_16 = arith.constant 0 : index
    %20 = vector.load %arg7[%c0_15, %c0_16] : memref<1x256xf32, #tpu.memory_space<vmem>>, vector<1x256xf32>
    %21 = vector.broadcast %20 : vector<1x256xf32> to vector<8x256xf32>
    %22 = arith.addf %19, %21 : vector<8x256xf32>
    %cst_17 = arith.constant 0.000000e+00 : f32
    %23 = vector.broadcast %cst_17 : f32 to vector<8x256xf32>
    %24 = arith.maximumf %22, %23 : vector<8x256xf32>
    %25 = arith.truncf %24 : vector<8x256xf32> to vector<8x256xbf16>
    %c0_18 = arith.constant 0 : index
    %c0_19 = arith.constant 0 : index
    %26 = vector.load %arg8[%c0_18, %c0_19] : memref<256x128xbf16, #tpu.memory_space<vmem>>, vector<256x128xbf16>
    %cst_20 = arith.constant dense<0.000000e+00> : vector<8x128xf32>
    %27 = tpu.matmul %25, %26, %cst_20 {dimension_numbers = #tpu.dot_dimension_numbers<[1], [0], [0], [1], [0, 0, 1, 1], [], []>} : vector<8x256xbf16>, vector<256x128xbf16>, vector<8x128xf32> -> vector<8x128xf32>
    %c0_21 = arith.constant 0 : index
    %c0_22 = arith.constant 0 : index
    %28 = vector.load %arg9[%c0_21, %c0_22] : memref<1x128xf32, #tpu.memory_space<vmem>>, vector<1x128xf32>
    %29 = vector.broadcast %28 : vector<1x128xf32> to vector<8x128xf32>
    %30 = arith.addf %27, %29 : vector<8x128xf32>
    %cst_23 = arith.constant 0.000000e+00 : f32
    %31 = vector.broadcast %cst_23 : f32 to vector<8x128xf32>
    %32 = arith.maximumf %30, %31 : vector<8x128xf32>
    %33 = arith.truncf %32 : vector<8x128xf32> to vector<8x128xbf16>
    %c0_24 = arith.constant 0 : index
    %c0_25 = arith.constant 0 : index
    %34 = vector.load %arg10[%c0_24, %c0_25] : memref<128x128xbf16, #tpu.memory_space<vmem>>, vector<128x128xbf16>
    %cst_26 = arith.constant dense<0.000000e+00> : vector<8x128xf32>
    %35 = tpu.matmul %33, %34, %cst_26 {dimension_numbers = #tpu.dot_dimension_numbers<[1], [0], [0], [1], [0, 0, 1, 1], [], []>} : vector<8x128xbf16>, vector<128x128xbf16>, vector<8x128xf32> -> vector<8x128xf32>
    %c0_27 = arith.constant 0 : index
    %c0_28 = arith.constant 0 : index
    %36 = vector.load %arg11[%c0_27, %c0_28] : memref<1x128xf32, #tpu.memory_space<vmem>>, vector<1x128xf32>
    %37 = vector.broadcast %36 : vector<1x128xf32> to vector<8x128xf32>
    %38 = arith.addf %35, %37 : vector<8x128xf32>
    %cst_29 = arith.constant 0.000000e+00 : f32
    %39 = vector.broadcast %cst_29 : f32 to vector<8x128xf32>
    %40 = arith.maximumf %38, %39 : vector<8x128xf32>
    %41 = arith.truncf %40 : vector<8x128xf32> to vector<8x128xbf16>
    %c0_30 = arith.constant 0 : index
    %c0_31 = arith.constant 0 : index
    %42 = vector.load %arg12[%c0_30, %c0_31] : memref<8x128xbf16, #tpu.memory_space<vmem>>, vector<8x128xbf16>
    tpu.vector_store %arg12[%c0_30, %c0_31], %41 {strides = array<i32>} : memref<8x128xbf16, #tpu.memory_space<vmem>>, vector<8x128xbf16>,
    return
  }
  func.func @transform_0(%arg0: i32) -> (i32, i32) {
    %c0_i32 = arith.constant 0 : i32
    %c0_i32_0 = arith.constant 0 : i32
    return %arg0, %c0_i32 : i32, i32
  }
  func.func @transform_1(%arg0: i32) -> (i32, i32) {
    %c0_i32 = arith.constant 0 : i32
    %c0_i32_0 = arith.constant 0 : i32
    %c0_i32_1 = arith.constant 0 : i32
    return %c0_i32, %c0_i32_0 : i32, i32
  }
  func.func @transform_2(%arg0: i32) -> (i32, i32) {
    %c0_i32 = arith.constant 0 : i32
    %c0_i32_0 = arith.constant 0 : i32
    %c0_i32_1 = arith.constant 0 : i32
    return %c0_i32, %c0_i32_0 : i32, i32
  }
  func.func @transform_3(%arg0: i32) -> (i32, i32) {
    %c0_i32 = arith.constant 0 : i32
    %c0_i32_0 = arith.constant 0 : i32
    %c0_i32_1 = arith.constant 0 : i32
    return %c0_i32, %c0_i32_0 : i32, i32
  }
  func.func @transform_4(%arg0: i32) -> (i32, i32) {
    %c0_i32 = arith.constant 0 : i32
    %c0_i32_0 = arith.constant 0 : i32
    %c0_i32_1 = arith.constant 0 : i32
    return %c0_i32, %c0_i32_0 : i32, i32
  }
  func.func @transform_5(%arg0: i32) -> (i32, i32) {
    %c0_i32 = arith.constant 0 : i32
    %c0_i32_0 = arith.constant 0 : i32
    %c0_i32_1 = arith.constant 0 : i32
    return %c0_i32, %c0_i32_0 : i32, i32
  }
  func.func @transform_6(%arg0: i32) -> (i32, i32) {
    %c0_i32 = arith.constant 0 : i32
    %c0_i32_0 = arith.constant 0 : i32
    %c0_i32_1 = arith.constant 0 : i32
    return %c0_i32, %c0_i32_0 : i32, i32
  }
  func.func @transform_7(%arg0: i32) -> (i32, i32) {
    %c0_i32 = arith.constant 0 : i32
    %c0_i32_0 = arith.constant 0 : i32
    %c0_i32_1 = arith.constant 0 : i32
    return %c0_i32, %c0_i32_0 : i32, i32
  }
  func.func @transform_8(%arg0: i32) -> (i32, i32) {
    %c0_i32 = arith.constant 0 : i32
    %c0_i32_0 = arith.constant 0 : i32
    %c0_i32_1 = arith.constant 0 : i32
    return %c0_i32, %c0_i32_0 : i32, i32
  }
  func.func @transform_9(%arg0: i32) -> (i32, i32) {
    %c0_i32 = arith.constant 0 : i32
    %c0_i32_0 = arith.constant 0 : i32
    %c0_i32_1 = arith.constant 0 : i32
    return %c0_i32, %c0_i32_0 : i32, i32
  }
  func.func @transform_10(%arg0: i32) -> (i32, i32) {
    %c0_i32 = arith.constant 0 : i32
    %c0_i32_0 = arith.constant 0 : i32
    %c0_i32_1 = arith.constant 0 : i32
    return %c0_i32, %c0_i32_0 : i32, i32
  }
  func.func @transform_11(%arg0: i32) -> (i32, i32) {
    %c0_i32 = arith.constant 0 : i32
    %c0_i32_0 = arith.constant 0 : i32
    return %arg0, %c0_i32 : i32, i32
  }
}

</mosaic_0001>

<bundles_post_ra>
// kernel: _forward_impl.1
= control target key start
LH: loop header
LB: loop body
LE: loop exit
PB: predicated region body
PF: predicated region fallthrough
CT: control target
= control target key end

     0   :  { %16 = vsyncpa [#allocation3], 0  ;;  %s5627_s0 = inlined_call_operand.vmem [shape: f32[8,784], index: 0, kind: input, shape index: {}]   ;;  %s5628_s1 = inlined_call_operand.hbm [shape: bf16[784,640], index: 1, kind: input, shape index: {}]   ;;  %s5629_s2 = inlined_call_operand.vmem [shape: f32[1,640], index: 2, kind: input, shape index: {}]   ;;  %s5630_s3 = inlined_call_operand.hbm [shape: bf16[640,384], index: 3, kind: input, shape index: {}]   ;;  %s5631_s4 = inlined_call_operand.vmem [shape: f32[1,384], index: 4, kind: input, shape index: {}]   ;;  %s5632_s5 = inlined_call_operand.hbm [shape: bf16[384,256], index: 5, kind: input, shape index: {}]   ;;  %s5633_s6 = inlined_call_operand.vmem [shape: f32[1,256], index: 6, kind: input, shape index: {}]   ;;  %s5634_s7 = inlined_call_operand.vmem [shape: bf16[256,128], index: 7, kind: input, shape index: {}]   ;;  %s5635_s8 = inlined_call_operand.vmem [shape: f32[1,128], index: 8, kind: input, shape index: {}]   ;;  %s5636_s9 = inlined_call_operand.vmem [shape: bf16[128,128], index: 9, kind: input, shape index: {}]   ;;  %s5637_s10 = inlined_call_operand.vmem [shape: f32[1,128], index: 10, kind: input, shape index: {}]   ;;  %s5638_s11 = inlined_call_operand.vmem [shape: bf16[8,128], index: 11, kind: output, shape index: {}]  }
   0x1   :  { %17 = vsyncpa [#allocation5], 0  ;;  %s5305_s17 = smov [#allocation4]   ;;  %s5235_s21 = scalar_lea.hbm %s5630_s3, 15360 }
   0x2   :  { %s39_s18 = sshll.u32 %s5305_s17, 4  ;;  %p5236_p0 = scmp.ne.s32.totalorder %s5630_s3, %s5235_s21  ;;  %s40_s18 = int_to_ptr.vmem [resolvable:$true] %s39_s18 }
   0x3   :  { %p5239_p1 = scmp.lt.u32.totalorder %s5235_s21, %s5630_s3 }
   0x5   :  { %p5241_p2 = pnand %p5239_p1, %p5236_p0 }
   0x7   :  { %5244 = shalt.err (!%p5241_p2)
}
   0x8   :  { %s5245_s26 = scalar_lea.vmem %s40_s18, 15360  ;;  %p5250_p4 = scmp.lt.s32.totalorder %s40_s18, %s40_s18 }
   0x9   :  { %p5246_p3 = scmp.ne.s32.totalorder %s40_s18, %s5245_s26  ;;  %p5251_p5 = scmp.lt.s32.totalorder %s5245_s26, %s5245_s26 }
   0xb   :  { %p5252_p6 = por %p5251_p5, %p5250_p4 }
   0xd   :  { %p5253_p7 = pnand %p5252_p6, %p5246_p3 }
   0xf   :  { %5256 = shalt.err (!%p5253_p7)
}
  0x10   :  { %s5306_s27 = smov 192   ;;  %s5307_s28 = smov 12  }
  0x11   :  { %45 = dma.hbm_to_vmem [thread:$0]  %s5630_s3, 15360, %s40_s18, [#allocation5], %s5306_s27, %s5306_s27, %s5307_s28  }
  0x12   :  { %s5308_s12 = smov [#allocation2]   ;;  %s5257_s16 = scalar_lea.hbm %s5628_s1, 31360 }
  0x13   :  { %s25_s13 = sshll.u32 %s5308_s12, 4  ;;  %p5258_p8 = scmp.ne.s32.totalorder %s5628_s1, %s5257_s16  ;;  %s26_s13 = int_to_ptr.vmem [resolvable:$true] %s25_s13 }
  0x14   :  { %p5261_p9 = scmp.lt.u32.totalorder %s5257_s16, %s5628_s1 }
  0x16   :  { %p5263_p10 = pnand %p5261_p9, %p5258_p8 }
  0x18   :  { %5266 = shalt.err (!%p5263_p10)
}
  0x19   :  { %s5267_s22 = scalar_lea.vmem %s26_s13, 31360  ;;  %p5272_p12 = scmp.lt.s32.totalorder %s26_s13, %s26_s13 }
  0x1a   :  { %p5268_p11 = scmp.ne.s32.totalorder %s26_s13, %s5267_s22  ;;  %p5273_p13 = scmp.lt.s32.totalorder %s5267_s22, %s5267_s22 }
  0x1c   :  { %p5274_p0 = por %p5273_p13, %p5272_p12 }
  0x1e   :  { %p5275_p1 = pnand %p5274_p0, %p5268_p11 }
  0x20   :  { %5278 = shalt.err (!%p5275_p1)
}
  0x21   :  { %s5309_s3 = smov 320   ;;  %s5310_s18 = smov 20  }
  0x22   :  { %31 = dma.hbm_to_vmem [thread:$0]  %s5628_s1, 31360, %s26_s13, [#allocation3], %s5309_s3, %s5309_s3, %s5310_s18  }
  0x23   :  { %s5311_s25 = smov [#allocation6]   ;;  %s5279_s29 = scalar_lea.hbm %s5632_s5, 6144 }
  0x24   :  { %s53_s26 = sshll.u32 %s5311_s25, 4  ;;  %p5280_p2 = scmp.ne.s32.totalorder %s5632_s5, %s5279_s29  ;;  %s54_s26 = int_to_ptr.vmem [resolvable:$true] %s53_s26 }
  0x25   :  { %p5283_p3 = scmp.lt.u32.totalorder %s5279_s29, %s5632_s5 }
  0x27   :  { %p5285_p4 = pnand %p5283_p3, %p5280_p2 }
  0x29   :  { %5288 = shalt.err (!%p5285_p4)
}
  0x2a   :  { %s5289_s16 = scalar_lea.vmem %s54_s26, 6144  ;;  %p5294_p6 = scmp.lt.s32.totalorder %s54_s26, %s54_s26 }
  0x2b   :  { %p5290_p5 = scmp.ne.s32.totalorder %s54_s26, %s5289_s16  ;;  %p5295_p7 = scmp.lt.s32.totalorder %s5289_s16, %s5289_s16 }
  0x2d   :  { %p5296_p8 = por %p5295_p7, %p5294_p6 }
  0x2f   :  { %p5297_p9 = pnand %p5296_p8, %p5290_p5 }
  0x31   :  { %5300 = shalt.err (!%p5297_p9)
}
  0x32   :  { %s5312_s1 = smov 128   ;;  %s5313_s13 = smov 8  }
  0x33   :  { %59 = dma.hbm_to_vmem [thread:$0]  %s5632_s5, 6144, %s54_s26, [#allocation5], %s5312_s1, %s5312_s1, %s5313_s13  }
  0x34   :  { %5301 = dma.done.wait [#allocation3], 31360  }
  0x35   :  { %5302 = vsyncadd [#allocation3], 4294935936 }
  0x36   :  { %5303 = dma.done.wait [#allocation5], 21504  }
  0x37   :  { %5304 = vsyncadd [#allocation5], 4294945792  ;;  %v4636_v0 = vld [vmem:[#allocation2 + $0x4] ss:$20 sps:$4 sm:$0xff]   ;;  %v4638_v1 = vld [vmem:[#allocation2 + $0xc] ss:$20 sps:$4 sm:$0xff]  }
  0x38   :  { %1693 = vmatprep.subr.bf16.mxu0 %v4636_v0  ;;  %v4640_v2 = vld [vmem:[#allocation2] ss:$20 sps:$4 sm:$0xff]   ;;  %v4641_v3 = vld [vmem:[#allocation2 + $0x8] ss:$20 sps:$4 sm:$0xff]   ;;  %1857 = vmatprep.subr.bf16.mxu1 %v4638_v1  ;;  %v4647_v7 = vld [vmem:[#allocation2 + $0x30] ss:$20 sps:$4 sm:$0xff]  }
  0x39   :  { %v4642_v4 = vld [vmem:[#allocation2 + $0x2c] ss:$20 sps:$4 sm:$0xff]   ;;  %1694 = vmatpush1.bf16.msra.mxu0 %v4640_v2  ;;  %1858 = vmatpush1.bf16.msra.mxu1 %v4641_v3  ;;  %v4644_v5 = vld [vmem:[#allocation2 + $0x34] ss:$20 sps:$4 sm:$0xff]   ;;  %v4650_v9 = vld [vmem:[#allocation2 + $0x5c] ss:$20 sps:$4 sm:$0xff]  }
  0x3a   :  { %v4646_v6 = vld [vmem:[#allocation2 + $0x28] ss:$20 sps:$4 sm:$0xff]   ;;  %1695 = vmatprep.subr.bf16.mxu0 %v4642_v4  ;;  %1859 = vmatprep.subr.bf16.mxu1 %v4644_v5  ;;  %v4652_v10 = vld [vmem:[#allocation2 + $0x50] ss:$20 sps:$4 sm:$0xff]   ;;  %v4653_v11 = vld [vmem:[#allocation2 + $0x58] ss:$20 sps:$4 sm:$0xff]  }
  0x3b   :  { %v4648_v8 = vld [vmem:[#allocation2 + $0x54] ss:$20 sps:$4 sm:$0xff]   ;;  %v4654_v12 = vld [vmem:[#allocation2 + $0x7c] ss:$20 sps:$4 sm:$0xff]   ;;  %v4656_v13 = vld [vmem:[#allocation2 + $0x84] ss:$20 sps:$4 sm:$0xff]  }
  0x3c   :  { %v4658_v14 = vld [vmem:[#allocation2 + $0x78] ss:$20 sps:$4 sm:$0xff]   ;;  %v4659_v15 = vld [vmem:[#allocation2 + $0x80] ss:$20 sps:$4 sm:$0xff]   ;;  %v4665_v19 = vld [vmem:[#allocation2 + $0xa8] ss:$20 sps:$4 sm:$0xff]  }
  0x3d   :  { %1696 = vmatpush1.bf16.msra.mxu0 %v4646_v6  ;;  %1860 = vmatpush1.bf16.msra.mxu1 %v4647_v7  ;;  %v4660_v16 = vld [vmem:[#allocation2 + $0xa4] ss:$20 sps:$4 sm:$0xff]   ;;  %v4662_v17 = vld [vmem:[#allocation2 + $0xac] ss:$20 sps:$4 sm:$0xff]   ;;  %v4668_v21 = vld [vmem:[#allocation2 + $0xd4] ss:$20 sps:$4 sm:$0xff]  }
  0x3e   :  { %1697 = vmatprep.subr.bf16.mxu0 %v4648_v8  ;;  %1861 = vmatprep.subr.bf16.mxu1 %v4650_v9  ;;  %v4664_v18 = vld [vmem:[#allocation2 + $0xa0] ss:$20 sps:$4 sm:$0xff]   ;;  %v4670_v22 = vld [vmem:[#allocation2 + $0xc8] ss:$20 sps:$4 sm:$0xff]   ;;  %v4671_v23 = vld [vmem:[#allocation2 + $0xd0] ss:$20 sps:$4 sm:$0xff]  }
  0x3f   :  { %v4666_v20 = vld [vmem:[#allocation2 + $0xcc] ss:$20 sps:$4 sm:$0xff]   ;;  %v4672_v24 = vld [vmem:[#allocation2 + $0xf4] ss:$20 sps:$4 sm:$0xff]   ;;  %v4674_v25 = vld [vmem:[#allocation2 + $0xfc] ss:$20 sps:$4 sm:$0xff]  }
  0x40   :  { %v4676_v26 = vld [vmem:[#allocation2 + $0xf0] ss:$20 sps:$4 sm:$0xff]   ;;  %v4677_v27 = vld [vmem:[#allocation2 + $0xf8] ss:$20 sps:$4 sm:$0xff]   ;;  %v4683_v31 = vld [vmem:[#allocation2 + $0x120] ss:$20 sps:$4 sm:$0xff]  }
  0x41   :  { %1698 = vmatpush1.bf16.msra.mxu0 %v4652_v10  ;;  %1862 = vmatpush1.bf16.msra.mxu1 %v4653_v11  ;;  %v4678_v28 = vld [vmem:[#allocation2 + $0x11c] ss:$20 sps:$4 sm:$0xff]   ;;  %v4680_v29 = vld [vmem:[#allocation2 + $0x124] ss:$20 sps:$4 sm:$0xff]   ;;  %v4686_v33 = vld [vmem:[#allocation2 + $0x14c] ss:$20 sps:$4 sm:$0xff]  }
  0x42   :  { %1699 = vmatprep.subr.bf16.mxu0 %v4654_v12  ;;  %1863 = vmatprep.subr.bf16.mxu1 %v4656_v13  ;;  %v4682_v30 = vld [vmem:[#allocation2 + $0x118] ss:$20 sps:$4 sm:$0xff]   ;;  %v4688_v34 = vld [vmem:[#allocation2 + $0x140] ss:$20 sps:$4 sm:$0xff]   ;;  %v4689_v35 = vld [vmem:[#allocation2 + $0x148] ss:$20 sps:$4 sm:$0xff]  }
  0x43   :  { %v4684_v32 = vld [vmem:[#allocation2 + $0x144] ss:$20 sps:$4 sm:$0xff]   ;;  %v4690_v36 = vld [vmem:[#allocation2 + $0x16c] ss:$20 sps:$4 sm:$0xff]   ;;  %v4692_v37 = vld [vmem:[#allocation2 + $0x174] ss:$20 sps:$4 sm:$0xff]  }
  0x44   :  { %v4694_v38 = vld [vmem:[#allocation2 + $0x168] ss:$20 sps:$4 sm:$0xff]   ;;  %v4695_v39 = vld [vmem:[#allocation2 + $0x170] ss:$20 sps:$4 sm:$0xff]   ;;  %v4701_v43 = vld [vmem:[#allocation2 + $0x198] ss:$20 sps:$4 sm:$0xff]  }
  0x45   :  { %1700 = vmatpush1.bf16.msra.mxu0 %v4658_v14  ;;  %1864 = vmatpush1.bf16.msra.mxu1 %v4659_v15  ;;  %v4696_v40 = vld [vmem:[#allocation2 + $0x194] ss:$20 sps:$4 sm:$0xff]   ;;  %v4698_v41 = vld [vmem:[#allocation2 + $0x19c] ss:$20 sps:$4 sm:$0xff]   ;;  %v4704_v45 = vld [vmem:[#allocation2 + $0x1c4] ss:$20 sps:$4 sm:$0xff]  }
  0x46   :  { %1701 = vmatprep.subr.bf16.mxu0 %v4660_v16  ;;  %1865 = vmatprep.subr.bf16.mxu1 %v4662_v17  ;;  %v4700_v42 = vld [vmem:[#allocation2 + $0x190] ss:$20 sps:$4 sm:$0xff]   ;;  %v81_v46 = vld [vmem:[%s5627_s0 + $0x8] sm:$0xff]  ;;  %v4707_v49 = vld [vmem:[#allocation2 + $0x1c0] ss:$20 sps:$4 sm:$0xff]   ;;  %vm1689_vm0 = vcmask 130048  }
  0x47   :  { %v4702_v44 = vld [vmem:[#allocation2 + $0x1bc] ss:$20 sps:$4 sm:$0xff]   ;;  %v4706_v47 = vld [vmem:[#allocation2 + $0x1b8] ss:$20 sps:$4 sm:$0xff]   ;;  %v5416_v48 = vpack.c.bf16 %v81_v46, %v81_v46  ;;  %v4712_v52 = vld [vmem:[#allocation2 + $0x1e0] ss:$20 sps:$4 sm:$0xff]  }
  0x48   :  { %v4708_v50 = vld [vmem:[#allocation2 + $0x1e4] ss:$20 sps:$4 sm:$0xff]   ;;  %v4710_v51 = vld [vmem:[#allocation2 + $0x1ec] ss:$20 sps:$4 sm:$0xff]   ;;  %v4713_v53 = vld [vmem:[#allocation2 + $0x1e8] ss:$20 sps:$4 sm:$0xff]  }
  0x49   :  { %1702 = vmatpush1.bf16.msra.mxu0 %v4664_v18  ;;  %1866 = vmatpush1.bf16.msra.mxu1 %v4665_v19  ;;  %v4714_v54 = vld [vmem:[#allocation2 + $0x20c] ss:$20 sps:$4 sm:$0xff]   ;;  %v4716_v55 = vld [vmem:[#allocation2 + $0x214] ss:$20 sps:$4 sm:$0xff]   ;;  %v4719_v57 = vld [vmem:[#allocation2 + $0x210] ss:$20 sps:$4 sm:$0xff]  }
  0x4a   :  { %1703 = vmatprep.subr.bf16.mxu0 %v4666_v20  ;;  %1867 = vmatprep.subr.bf16.mxu1 %v4668_v21  ;;  %v4718_v56 = vld [vmem:[#allocation2 + $0x208] ss:$20 sps:$4 sm:$0xff]   ;;  %v4724_v60 = vld [vmem:[#allocation2 + $0x230] ss:$20 sps:$4 sm:$0xff]   ;;  %v4725_v61 = vld [vmem:[#allocation2 + $0x238] ss:$20 sps:$4 sm:$0xff]  }
  0x4b   :  { %1725 = vmatprep.mubr.bf16.mxu0 %v5416_v48  ;;  %1889 = vmatprep.mubr.bf16.mxu1 %v5416_v48  ;;  %v4720_v58 = vld [vmem:[#allocation2 + $0x234] ss:$20 sps:$4 sm:$0xff]   ;;  %v4722_v59 = vld [vmem:[#allocation2 + $0x23c] ss:$20 sps:$4 sm:$0xff]   ;;  %v4728_v63 = vld [vmem:[#allocation2 + $0x264] ss:$20 sps:$4 sm:$0xff]  }
  0x4c   :  { %v4726_v62 = vld [vmem:[#allocation2 + $0x25c] ss:$20 sps:$4 sm:$0xff]   ;;  %v4730_v0 = vld [vmem:[#allocation2 + $0x258] ss:$20 sps:$4 sm:$0xff]   ;;  %v4731_v1 = vld [vmem:[#allocation2 + $0x260] ss:$20 sps:$4 sm:$0xff]  }
  0x4d   :  { %1704 = vmatpush1.bf16.msra.mxu0 %v4670_v22  ;;  %1868 = vmatpush1.bf16.msra.mxu1 %v4671_v23  ;;  %v80_v2 = vld [vmem:[%s5627_s0] sm:$0xff]  ;;  %v4735_v7 = vld [vmem:[#allocation2 + $0x288] ss:$20 sps:$4 sm:$0xff]   ;;  %v4747_v15 = vld [vmem:[#allocation2 + $0x2d8] ss:$20 sps:$4 sm:$0xff]   ;;  %vm5316_vm1 = vmmov 0  }
  0x4e   :  { %1705 = vmatprep.subr.bf16.mxu0 %v4672_v24  ;;  %1869 = vmatprep.subr.bf16.mxu1 %v4674_v25  ;;  %v4734_v3 = vld [vmem:[#allocation2 + $0x284] ss:$20 sps:$4 sm:$0xff]   ;;  %v4737_v4 = vld [vmem:[#allocation2 + $0x28c] ss:$20 sps:$4 sm:$0xff]   ;;  %v5423_v5 = vpack.c.bf16 %v80_v2, %v80_v2  ;;  %v4743_v9 = vld [vmem:[#allocation2 + $0x2b4] ss:$20 sps:$4 sm:$0xff]  }
  0x4f   :  { %v4732_v6 = vld [vmem:[#allocation2 + $0x280] ss:$20 sps:$4 sm:$0xff]   ;;  %v4738_v10 = vld [vmem:[#allocation2 + $0x2a8] ss:$20 sps:$4 sm:$0xff]   ;;  %v4741_v11 = vld [vmem:[#allocation2 + $0x2b0] ss:$20 sps:$4 sm:$0xff]  }
  0x50   :  { %v4740_v8 = vld [vmem:[#allocation2 + $0x2ac] ss:$20 sps:$4 sm:$0xff]   ;;  %v4746_v12 = vld [vmem:[#allocation2 + $0x2d4] ss:$20 sps:$4 sm:$0xff]   ;;  %v4749_v13 = vld [vmem:[#allocation2 + $0x2dc] ss:$20 sps:$4 sm:$0xff]  }
  0x51   :  { %1706 = vmatpush1.bf16.msra.mxu0 %v4676_v26  ;;  %1870 = vmatpush1.bf16.msra.mxu1 %v4677_v27  ;;  %v4744_v14 = vld [vmem:[#allocation2 + $0x2d0] ss:$20 sps:$4 sm:$0xff]   ;;  %v4750_v18 = vld [vmem:[#allocation2 + $0x2f8] ss:$20 sps:$4 sm:$0xff]   ;;  %v4753_v19 = vld [vmem:[#allocation2 + $0x300] ss:$20 sps:$4 sm:$0xff]  }
  0x52   :  { %1707 = vmatprep.subr.bf16.mxu0 %v4678_v28  ;;  %1871 = vmatprep.subr.bf16.mxu1 %v4680_v29  ;;  %v4752_v16 = vld [vmem:[#allocation2 + $0x2fc] ss:$20 sps:$4 sm:$0xff]   ;;  %v4755_v17 = vld [vmem:[#allocation2 + $0x304] ss:$20 sps:$4 sm:$0xff]   ;;  %v4761_v21 = vld [vmem:[#allocation2 + $0x32c] ss:$20 sps:$4 sm:$0xff]  }
  0x53   :  { %v4758_v20 = vld [vmem:[#allocation2 + $0x324] ss:$20 sps:$4 sm:$0xff]   ;;  %v4756_v22 = vld [vmem:[#allocation2 + $0x320] ss:$20 sps:$4 sm:$0xff]   ;;  %v4759_v23 = vld [vmem:[#allocation2 + $0x328] ss:$20 sps:$4 sm:$0xff]  }
  0x54   :  { %v4764_v24 = vld [vmem:[#allocation2 + $0x34c] ss:$20 sps:$4 sm:$0xff]   ;;  %v4767_v25 = vld [vmem:[#allocation2 + $0x354] ss:$20 sps:$4 sm:$0xff]   ;;  %v4765_v27 = vld [vmem:[#allocation2 + $0x350] ss:$20 sps:$4 sm:$0xff]  }
  0x55   :  { %1708 = vmatpush1.bf16.msra.mxu0 %v4682_v30  ;;  %1872 = vmatpush1.bf16.msra.mxu1 %v4683_v31  ;;  %v4762_v26 = vld [vmem:[#allocation2 + $0x348] ss:$20 sps:$4 sm:$0xff]   ;;  %v4768_v31 = vld [vmem:[#allocation2 + $0x370] ss:$20 sps:$4 sm:$0xff]   ;;  %v4819_v2 = vld [vmem:[#allocation2 + $0x4b8] ss:$20 sps:$4 sm:$0xff]  }
  0x56   :  { %1709 = vmatprep.subr.bf16.mxu0 %v4684_v32  ;;  %1873 = vmatprep.subr.bf16.mxu1 %v4686_v33  ;;  %v4770_v28 = vld [vmem:[#allocation2 + $0x374] ss:$20 sps:$4 sm:$0xff]   ;;  %v4773_v29 = vld [vmem:[#allocation2 + $0x37c] ss:$20 sps:$4 sm:$0xff]   ;;  %v4771_v33 = vld [vmem:[#allocation2 + $0x378] ss:$20 sps:$4 sm:$0xff]  }
  0x57   :  { %v83_v30 = vld [vmem:[%s5627_s0 + $0x18] sm:$0xff]  ;;  %v4794_v46 = vld [vmem:[#allocation2 + $0x414] ss:$20 sps:$4 sm:$0xff]  }
  0x58   :  { %v5430_v32 = vpack.c.bf16 %v83_v30, %v83_v30  ;;  %v4852_v30 = vld [vmem:[#allocation2 + $0x5a0] ss:$20 sps:$4 sm:$0xff]  }
  0x59   :  { %1710 = vmatpush1.bf16.msra.mxu0 %v4688_v34  ;;  %1874 = vmatpush1.bf16.msra.mxu1 %v4689_v35  ;;  %v4776_v34 = vld [vmem:[#allocation2 + $0x39c] ss:$20 sps:$4 sm:$0xff]   ;;  %v4779_v35 = vld [vmem:[#allocation2 + $0x3a4] ss:$20 sps:$4 sm:$0xff]  }
  0x5a   :  { %1711 = vmatprep.subr.bf16.mxu0 %v4690_v36  ;;  %1875 = vmatprep.subr.bf16.mxu1 %v4692_v37  ;;  %v4774_v36 = vld [vmem:[#allocation2 + $0x398] ss:$20 sps:$4 sm:$0xff]   ;;  %v4777_v37 = vld [vmem:[#allocation2 + $0x3a0] ss:$20 sps:$4 sm:$0xff]  }
  0x5d   :  { %1712 = vmatpush1.bf16.msra.mxu0 %v4694_v38  ;;  %1876 = vmatpush1.bf16.msra.mxu1 %v4695_v39  ;;  %v4782_v38 = vld [vmem:[#allocation2 + $0x3c4] ss:$20 sps:$4 sm:$0xff]   ;;  %v4785_v39 = vld [vmem:[#allocation2 + $0x3cc] ss:$20 sps:$4 sm:$0xff]  }
  0x5e   :  { %1713 = vmatprep.subr.bf16.mxu0 %v4696_v40  ;;  %1877 = vmatprep.subr.bf16.mxu1 %v4698_v41  ;;  %v4780_v40 = vld [vmem:[#allocation2 + $0x3c0] ss:$20 sps:$4 sm:$0xff]   ;;  %v4783_v41 = vld [vmem:[#allocation2 + $0x3c8] ss:$20 sps:$4 sm:$0xff]  }
  0x61   :  { %1714 = vmatpush1.bf16.msra.mxu0 %v4700_v42  ;;  %1878 = vmatpush1.bf16.msra.mxu1 %v4701_v43  ;;  %v4788_v42 = vld [vmem:[#allocation2 + $0x3ec] ss:$20 sps:$4 sm:$0xff]   ;;  %v4791_v43 = vld [vmem:[#allocation2 + $0x3f4] ss:$20 sps:$4 sm:$0xff]  }
  0x62   :  { %1715 = vmatprep.subr.bf16.mxu0 %v4702_v44  ;;  %1879 = vmatprep.subr.bf16.mxu1 %v4704_v45  ;;  %v4786_v44 = vld [vmem:[#allocation2 + $0x3e8] ss:$20 sps:$4 sm:$0xff]   ;;  %v4789_v45 = vld [vmem:[#allocation2 + $0x3f0] ss:$20 sps:$4 sm:$0xff]  }
  0x65   :  { %1716 = vmatpush1.bf16.msra.mxu0 %v4706_v47  ;;  %1880 = vmatpush1.bf16.msra.mxu1 %v4707_v49  ;;  %v4797_v47 = vld [vmem:[#allocation2 + $0x41c] ss:$20 sps:$4 sm:$0xff]  }
  0x66   :  { %1717 = vmatprep.subr.bf16.mxu0 %v4708_v50  ;;  %1881 = vmatprep.subr.bf16.mxu1 %v4710_v51  ;;  %v4792_v49 = vld [vmem:[#allocation2 + $0x410] ss:$20 sps:$4 sm:$0xff]   ;;  %v4795_v50 = vld [vmem:[#allocation2 + $0x418] ss:$20 sps:$4 sm:$0xff]  }
  0x67   :  { %v4800_v51 = vld [vmem:[#allocation2 + $0x43c] ss:$20 sps:$4 sm:$0xff]  }
  0x69   :  { %1718 = vmatpush1.bf16.msra.mxu0 %v4712_v52  ;;  %1882 = vmatpush1.bf16.msra.mxu1 %v4713_v53  ;;  %v4803_v52 = vld [vmem:[#allocation2 + $0x444] ss:$20 sps:$4 sm:$0xff]  }
  0x6a   :  { %1719 = vmatprep.subr.bf16.mxu0 %v4714_v54  ;;  %1883 = vmatprep.subr.bf16.mxu1 %v4716_v55  ;;  %v4798_v53 = vld [vmem:[#allocation2 + $0x438] ss:$20 sps:$4 sm:$0xff]   ;;  %v4801_v54 = vld [vmem:[#allocation2 + $0x440] ss:$20 sps:$4 sm:$0xff]  }
  0x6b   :  { %v4806_v55 = vld [vmem:[#allocation2 + $0x464] ss:$20 sps:$4 sm:$0xff]  }
  0x6d   :  { %1720 = vmatpush1.bf16.msra.mxu0 %v4718_v56  ;;  %1884 = vmatpush1.bf16.msra.mxu1 %v4719_v57  ;;  %v4809_v56 = vld [vmem:[#allocation2 + $0x46c] ss:$20 sps:$4 sm:$0xff]  }
  0x6e   :  { %1721 = vmatprep.subr.bf16.mxu0 %v4720_v58  ;;  %1885 = vmatprep.subr.bf16.mxu1 %v4722_v59  ;;  %v4804_v57 = vld [vmem:[#allocation2 + $0x460] ss:$20 sps:$4 sm:$0xff]   ;;  %v4807_v58 = vld [vmem:[#allocation2 + $0x468] ss:$20 sps:$4 sm:$0xff]  }
  0x6f   :  { %v4812_v59 = vld [vmem:[#allocation2 + $0x48c] ss:$20 sps:$4 sm:$0xff]  }
  0x71   :  { %1722 = vmatpush1.bf16.msra.mxu0 %v4724_v60  ;;  %1886 = vmatpush1.bf16.msra.mxu1 %v4725_v61  ;;  %v4815_v60 = vld [vmem:[#allocation2 + $0x494] ss:$20 sps:$4 sm:$0xff]  }
  0x72   :  { %1723 = vmatprep.subr.bf16.mxu0 %v4726_v62  ;;  %1887 = vmatprep.subr.bf16.mxu1 %v4728_v63  ;;  %v4810_v61 = vld [vmem:[#allocation2 + $0x488] ss:$20 sps:$4 sm:$0xff]   ;;  %v4813_v62 = vld [vmem:[#allocation2 + $0x490] ss:$20 sps:$4 sm:$0xff]  }
  0x73   :  { %v4818_v63 = vld [vmem:[#allocation2 + $0x4b4] ss:$20 sps:$4 sm:$0xff]  }
  0x75   :  { %1724 = vmatpush1.bf16.msra.mxu0 %v4730_v0  ;;  %1888 = vmatpush1.bf16.msra.mxu1 %v4731_v1  ;;  %v4821_v0 = vld [vmem:[#allocation2 + $0x4bc] ss:$20 sps:$4 sm:$0xff]  }
  0x76   :  { %1734 = vmatprep.subr.bf16.mxu0 %v4734_v3  ;;  %1898 = vmatprep.subr.bf16.mxu1 %v4737_v4  ;;  %v4816_v1 = vld [vmem:[#allocation2 + $0x4b0] ss:$20 sps:$4 sm:$0xff]  }
  0x77   :  { %v4824_v3 = vld [vmem:[#allocation2 + $0x4dc] ss:$20 sps:$4 sm:$0xff]   ;;  %v4827_v4 = vld [vmem:[#allocation2 + $0x4e4] ss:$20 sps:$4 sm:$0xff]  }
  0x78   :  { %1726 = vmatmul.mubr.bf16.vlgmr.msra.gmra.mrb[0].mxu0 %v5423_v5  ;;  %1890 = vmatmul.mubr.bf16.vlgmr.msra.gmra.mrb[0].mxu1 %v5423_v5 }
  0x79   :  { %1735 = vmatpush1.bf16.msra.mxu0 %v4732_v6  ;;  %1899 = vmatpush1.bf16.msra.mxu1 %v4735_v7  ;;  %v4822_v6 = vld [vmem:[#allocation2 + $0x4d8] ss:$20 sps:$4 sm:$0xff]   ;;  %v4825_v7 = vld [vmem:[#allocation2 + $0x4e0] ss:$20 sps:$4 sm:$0xff]  }
  0x7a   :  { %1736 = vmatprep.subr.bf16.mxu0 %v4740_v8  ;;  %1900 = vmatprep.subr.bf16.mxu1 %v4743_v9  ;;  %v4830_v8 = vld [vmem:[#allocation2 + $0x504] ss:$20 sps:$4 sm:$0xff]   ;;  %v82_v9 = vld [vmem:[%s5627_s0 + $0x10] sm:$0xff] }
  0x7b   :  { %1766 = vmatprep.mubr.bf16.mxu0 %v5430_v32  ;;  %1930 = vmatprep.mubr.bf16.mxu1 %v5430_v32 }
  0x7d   :  { %1737 = vmatpush1.bf16.msra.mxu0 %v4738_v10  ;;  %1901 = vmatpush1.bf16.msra.mxu1 %v4741_v11  ;;  %v4833_v10 = vld [vmem:[#allocation2 + $0x50c] ss:$20 sps:$4 sm:$0xff]  }
  0x7e   :  { %1738 = vmatprep.subr.bf16.mxu0 %v4746_v12  ;;  %1902 = vmatprep.subr.bf16.mxu1 %v4749_v13  ;;  %v4828_v11 = vld [vmem:[#allocation2 + $0x500] ss:$20 sps:$4 sm:$0xff]   ;;  %v5437_v12 = vpack.c.bf16 %v82_v9, %v82_v9  ;;  %v4831_v13 = vld [vmem:[#allocation2 + $0x508] ss:$20 sps:$4 sm:$0xff]   ;;  %v4912_v9 = vld [vmem:[#allocation2 + $0x730] ss:$20 sps:$4 sm:$0xff]  }
  0x81   :  { %1739 = vmatpush1.bf16.msra.mxu0 %v4744_v14  ;;  %1903 = vmatpush1.bf16.msra.mxu1 %v4747_v15  ;;  %v4836_v14 = vld [vmem:[#allocation2 + $0x52c] ss:$20 sps:$4 sm:$0xff]   ;;  %v4839_v15 = vld [vmem:[#allocation2 + $0x534] ss:$20 sps:$4 sm:$0xff]  }
  0x82   :  { %1740 = vmatprep.subr.bf16.mxu0 %v4752_v16  ;;  %1904 = vmatprep.subr.bf16.mxu1 %v4755_v17  ;;  %v85_v16 = vld [vmem:[%s5627_s0 + $0x28] sm:$0xff] }
  0x83   :  { %v5442_v17 = vpack.c.bf16 %v85_v16, %v85_v16  ;;  %v84_v16 = vld [vmem:[%s5627_s0 + $0x20] sm:$0xff] }
  0x85   :  { %1741 = vmatpush1.bf16.msra.mxu0 %v4750_v18  ;;  %1905 = vmatpush1.bf16.msra.mxu1 %v4753_v19  ;;  %v4834_v18 = vld [vmem:[#allocation2 + $0x528] ss:$20 sps:$4 sm:$0xff]   ;;  %v4837_v19 = vld [vmem:[#allocation2 + $0x530] ss:$20 sps:$4 sm:$0xff]  }
  0x86   :  { %1742 = vmatprep.subr.bf16.mxu0 %v4758_v20  ;;  %1906 = vmatprep.subr.bf16.mxu1 %v4761_v21  ;;  %v4842_v20 = vld [vmem:[#allocation2 + $0x554] ss:$20 sps:$4 sm:$0xff]   ;;  %v4845_v21 = vld [vmem:[#allocation2 + $0x55c] ss:$20 sps:$4 sm:$0xff]  }
  0x89   :  { %1743 = vmatpush1.bf16.msra.mxu0 %v4756_v22  ;;  %1907 = vmatpush1.bf16.msra.mxu1 %v4759_v23  ;;  %v4840_v22 = vld [vmem:[#allocation2 + $0x550] ss:$20 sps:$4 sm:$0xff]   ;;  %v4843_v23 = vld [vmem:[#allocation2 + $0x558] ss:$20 sps:$4 sm:$0xff]  }
  0x8a   :  { %1744 = vmatprep.subr.bf16.mxu0 %v4764_v24  ;;  %1908 = vmatprep.subr.bf16.mxu1 %v4767_v25  ;;  %v4848_v24 = vld [vmem:[#allocation2 + $0x57c] ss:$20 sps:$4 sm:$0xff]   ;;  %v4851_v25 = vld [vmem:[#allocation2 + $0x584] ss:$20 sps:$4 sm:$0xff]  }
  0x8d   :  { %1745 = vmatpush1.bf16.msra.mxu0 %v4762_v26  ;;  %1909 = vmatpush1.bf16.msra.mxu1 %v4765_v27  ;;  %v4846_v26 = vld [vmem:[#allocation2 + $0x578] ss:$20 sps:$4 sm:$0xff]   ;;  %v4849_v27 = vld [vmem:[#allocation2 + $0x580] ss:$20 sps:$4 sm:$0xff]  }
  0x8e   :  { %1746 = vmatprep.subr.bf16.mxu0 %v4770_v28  ;;  %1910 = vmatprep.subr.bf16.mxu1 %v4773_v29  ;;  %v4854_v28 = vld [vmem:[#allocation2 + $0x5a4] ss:$20 sps:$4 sm:$0xff]   ;;  %v4857_v29 = vld [vmem:[#allocation2 + $0x5ac] ss:$20 sps:$4 sm:$0xff]  }
  0x91   :  { %1747 = vmatpush1.bf16.msra.mxu0 %v4768_v31  ;;  %1911 = vmatpush1.bf16.msra.mxu1 %v4771_v33  ;;  %v4855_v31 = vld [vmem:[#allocation2 + $0x5a8] ss:$20 sps:$4 sm:$0xff]   ;;  %v4860_v33 = vld [vmem:[#allocation2 + $0x5cc] ss:$20 sps:$4 sm:$0xff]  }
  0x92   :  { %1748 = vmatprep.subr.bf16.mxu0 %v4776_v34  ;;  %1912 = vmatprep.subr.bf16.mxu1 %v4779_v35  ;;  %v4863_v34 = vld [vmem:[#allocation2 + $0x5d4] ss:$20 sps:$4 sm:$0xff]  }
  0x93   :  { %v4858_v35 = vld [vmem:[#allocation2 + $0x5c8] ss:$20 sps:$4 sm:$0xff]  }
  0x95   :  { %1749 = vmatpush1.bf16.msra.mxu0 %v4774_v36  ;;  %1913 = vmatpush1.bf16.msra.mxu1 %v4777_v37  ;;  %v4861_v36 = vld [vmem:[#allocation2 + $0x5d0] ss:$20 sps:$4 sm:$0xff]   ;;  %v4866_v37 = vld [vmem:[#allocation2 + $0x5f4] ss:$20 sps:$4 sm:$0xff]  }
  0x96   :  { %1750 = vmatprep.subr.bf16.mxu0 %v4782_v38  ;;  %1914 = vmatprep.subr.bf16.mxu1 %v4785_v39  ;;  %v4869_v38 = vld [vmem:[#allocation2 + $0x5fc] ss:$20 sps:$4 sm:$0xff]  }
  0x97   :  { %v4864_v39 = vld [vmem:[#allocation2 + $0x5f0] ss:$20 sps:$4 sm:$0xff]  }
  0x99   :  { %1751 = vmatpush1.bf16.msra.mxu0 %v4780_v40  ;;  %1915 = vmatpush1.bf16.msra.mxu1 %v4783_v41  ;;  %v4867_v40 = vld [vmem:[#allocation2 + $0x5f8] ss:$20 sps:$4 sm:$0xff]   ;;  %v4872_v41 = vld [vmem:[#allocation2 + $0x61c] ss:$20 sps:$4 sm:$0xff]  }
  0x9a   :  { %1752 = vmatprep.subr.bf16.mxu0 %v4788_v42  ;;  %1916 = vmatprep.subr.bf16.mxu1 %v4791_v43  ;;  %v4875_v42 = vld [vmem:[#allocation2 + $0x624] ss:$20 sps:$4 sm:$0xff]  }
  0x9b   :  { %v4870_v43 = vld [vmem:[#allocation2 + $0x618] ss:$20 sps:$4 sm:$0xff]  }
  0x9d   :  { %1753 = vmatpush1.bf16.msra.mxu0 %v4786_v44  ;;  %1917 = vmatpush1.bf16.msra.mxu1 %v4789_v45  ;;  %v4873_v44 = vld [vmem:[#allocation2 + $0x620] ss:$20 sps:$4 sm:$0xff]   ;;  %v4878_v45 = vld [vmem:[#allocation2 + $0x644] ss:$20 sps:$4 sm:$0xff]  }
  0x9e   :  { %1754 = vmatprep.subr.bf16.mxu0 %v4794_v46  ;;  %1918 = vmatprep.subr.bf16.mxu1 %v4797_v47  ;;  %v4881_v46 = vld [vmem:[#allocation2 + $0x64c] ss:$20 sps:$4 sm:$0xff]  }
  0x9f   :  { %v4876_v47 = vld [vmem:[#allocation2 + $0x640] ss:$20 sps:$4 sm:$0xff]  }
  0xa1   :  { %1755 = vmatpush1.bf16.msra.mxu0 %v4792_v49  ;;  %1919 = vmatpush1.bf16.msra.mxu1 %v4795_v50  ;;  %v4879_v49 = vld [vmem:[#allocation2 + $0x648] ss:$20 sps:$4 sm:$0xff]   ;;  %v4884_v50 = vld [vmem:[#allocation2 + $0x66c] ss:$20 sps:$4 sm:$0xff]  }
  0xa2   :  { %1756 = vmatprep.subr.bf16.mxu0 %v4800_v51  ;;  %1920 = vmatprep.subr.bf16.mxu1 %v4803_v52  ;;  %v4887_v51 = vld [vmem:[#allocation2 + $0x674] ss:$20 sps:$4 sm:$0xff]  }
  0xa3   :  { %v4882_v52 = vld [vmem:[#allocation2 + $0x668] ss:$20 sps:$4 sm:$0xff]  }
  0xa5   :  { %1757 = vmatpush1.bf16.msra.mxu0 %v4798_v53  ;;  %1921 = vmatpush1.bf16.msra.mxu1 %v4801_v54  ;;  %v4885_v53 = vld [vmem:[#allocation2 + $0x670] ss:$20 sps:$4 sm:$0xff]   ;;  %v4890_v54 = vld [vmem:[#allocation2 + $0x694] ss:$20 sps:$4 sm:$0xff]  }
  0xa6   :  { %1758 = vmatprep.subr.bf16.mxu0 %v4806_v55  ;;  %1922 = vmatprep.subr.bf16.mxu1 %v4809_v56  ;;  %v4893_v55 = vld [vmem:[#allocation2 + $0x69c] ss:$20 sps:$4 sm:$0xff]  }
  0xa7   :  { %v4888_v56 = vld [vmem:[#allocation2 + $0x690] ss:$20 sps:$4 sm:$0xff]  }
  0xa9   :  { %1759 = vmatpush1.bf16.msra.mxu0 %v4804_v57  ;;  %1923 = vmatpush1.bf16.msra.mxu1 %v4807_v58  ;;  %v4891_v57 = vld [vmem:[#allocation2 + $0x698] ss:$20 sps:$4 sm:$0xff]   ;;  %v4896_v58 = vld [vmem:[#allocation2 + $0x6bc] ss:$20 sps:$4 sm:$0xff]  }
  0xaa   :  { %1760 = vmatprep.subr.bf16.mxu0 %v4812_v59  ;;  %1924 = vmatprep.subr.bf16.mxu1 %v4815_v60  ;;  %v4899_v59 = vld [vmem:[#allocation2 + $0x6c4] ss:$20 sps:$4 sm:$0xff]  }
  0xab   :  { %v4894_v60 = vld [vmem:[#allocation2 + $0x6b8] ss:$20 sps:$4 sm:$0xff]  }
  0xad   :  { %1761 = vmatpush1.bf16.msra.mxu0 %v4810_v61  ;;  %1925 = vmatpush1.bf16.msra.mxu1 %v4813_v62  ;;  %v4897_v61 = vld [vmem:[#allocation2 + $0x6c0] ss:$20 sps:$4 sm:$0xff]   ;;  %v4902_v62 = vld [vmem:[#allocation2 + $0x6e4] ss:$20 sps:$4 sm:$0xff]  }
  0xae   :  { %1762 = vmatprep.subr.bf16.mxu0 %v4818_v63  ;;  %1926 = vmatprep.subr.bf16.mxu1 %v4821_v0  ;;  %v4905_v63 = vld [vmem:[#allocation2 + $0x6ec] ss:$20 sps:$4 sm:$0xff]  }
  0xaf   :  { %v4900_v0 = vld [vmem:[#allocation2 + $0x6e0] ss:$20 sps:$4 sm:$0xff]  }
  0xb1   :  { %1763 = vmatpush1.bf16.msra.mxu0 %v4816_v1  ;;  %1927 = vmatpush1.bf16.msra.mxu1 %v4819_v2  ;;  %v4903_v1 = vld [vmem:[#allocation2 + $0x6e8] ss:$20 sps:$4 sm:$0xff]   ;;  %v4908_v2 = vld [vmem:[#allocation2 + $0x70c] ss:$20 sps:$4 sm:$0xff]  }
  0xb2   :  { %1764 = vmatprep.subr.bf16.mxu0 %v4824_v3  ;;  %1928 = vmatprep.subr.bf16.mxu1 %v4827_v4  ;;  %v4911_v3 = vld [vmem:[#allocation2 + $0x714] ss:$20 sps:$4 sm:$0xff]  }
  0xb3   :  { %v4906_v4 = vld [vmem:[#allocation2 + $0x708] ss:$20 sps:$4 sm:$0xff]  }
  0xb5   :  { %1765 = vmatpush1.bf16.msra.mxu0 %v4822_v6  ;;  %1929 = vmatpush1.bf16.msra.mxu1 %v4825_v7  ;;  %v4909_v6 = vld [vmem:[#allocation2 + $0x710] ss:$20 sps:$4 sm:$0xff]   ;;  %v4914_v7 = vld [vmem:[#allocation2 + $0x734] ss:$20 sps:$4 sm:$0xff]  }
  0xb6   :  { %1775 = vmatprep.subr.bf16.mxu0 %v4830_v8  ;;  %1939 = vmatprep.subr.bf16.mxu1 %v4833_v10  ;;  %v4917_v8 = vld [vmem:[#allocation2 + $0x73c] ss:$20 sps:$4 sm:$0xff]   ;;  %v4915_v10 = vld [vmem:[#allocation2 + $0x738] ss:$20 sps:$4 sm:$0xff]  }
  0xb8   :  { %1767 = vmatmul.mubr.bf16.vlgmr.msra.gmra.mrb[0].mxu0 %v5437_v12  ;;  %1931 = vmatmul.mubr.bf16.vlgmr.msra.gmra.mrb[0].mxu1 %v5437_v12 }
  0xb9   :  { %1776 = vmatpush1.bf16.msra.mxu0 %v4828_v11  ;;  %1940 = vmatpush1.bf16.msra.mxu1 %v4831_v13  ;;  %v4920_v11 = vld [vmem:[#allocation2 + $0x75c] ss:$20 sps:$4 sm:$0xff]   ;;  %v4923_v13 = vld [vmem:[#allocation2 + $0x764] ss:$20 sps:$4 sm:$0xff]  }
  0xba   :  { %1777 = vmatprep.subr.bf16.mxu0 %v4836_v14  ;;  %1941 = vmatprep.subr.bf16.mxu1 %v4839_v15  ;;  %v4918_v14 = vld [vmem:[#allocation2 + $0x758] ss:$20 sps:$4 sm:$0xff]   ;;  %v4921_v15 = vld [vmem:[#allocation2 + $0x760] ss:$20 sps:$4 sm:$0xff]  }
  0xbb   :  { %1807 = vmatprep.mubr.bf16.mxu0 %v5442_v17  ;;  %1971 = vmatprep.mubr.bf16.mxu1 %v5442_v17 }
  0xbd   :  { %1778 = vmatpush1.bf16.msra.mxu0 %v4834_v18  ;;  %1942 = vmatpush1.bf16.msra.mxu1 %v4837_v19  ;;  %v4926_v18 = vld [vmem:[#allocation2 + $0x784] ss:$20 sps:$4 sm:$0xff]   ;;  %v4929_v19 = vld [vmem:[#allocation2 + $0x78c] ss:$20 sps:$4 sm:$0xff]  }
  0xbe   :  { %1779 = vmatprep.subr.bf16.mxu0 %v4842_v20  ;;  %1943 = vmatprep.subr.bf16.mxu1 %v4845_v21  ;;  %v5451_v20 = vpack.c.bf16 %v84_v16, %v84_v16  ;;  %v4924_v21 = vld [vmem:[#allocation2 + $0x780] ss:$20 sps:$4 sm:$0xff]   ;;  %v4993_v16 = vld [vmem:[#allocation4 + $0x64] ss:$12 sps:$4 sm:$0xff]  }
  0xc1   :  { %1780 = vmatpush1.bf16.msra.mxu0 %v4840_v22  ;;  %1944 = vmatpush1.bf16.msra.mxu1 %v4843_v23  ;;  %v4927_v22 = vld [vmem:[#allocation2 + $0x788] ss:$20 sps:$4 sm:$0xff]   ;;  %v4930_v23 = vld [vmem:[#allocation2 + $0x150] ss:$20 sps:$4 sm:$0xff]  }
  0xc2   :  { %1781 = vmatprep.subr.bf16.mxu0 %v4848_v24  ;;  %1945 = vmatprep.subr.bf16.mxu1 %v4851_v25  ;;  %v4946_v24 = vld [vmem:[#allocation2 + $0x3d0] ss:$20 sps:$4 sm:$0xff]   ;;  %v5314_v25 = vmov 0  }
  0xc5   :  { %1782 = vmatpush1.bf16.msra.mxu0 %v4846_v26  ;;  %1946 = vmatpush1.bf16.msra.mxu1 %v4849_v27  ;;  %v86_v26 = vld [vmem:[%s5627_s0 + $0x30] sm:$0xff] }
  0xc6   :  { %1783 = vmatprep.subr.bf16.mxu0 %v4854_v28  ;;  %1947 = vmatprep.subr.bf16.mxu1 %v4857_v29  ;;  %v5460_v27 = vpack.c.bf16 %v86_v26, %v86_v26  ;;  %v4931_v28 = vld [vmem:[#allocation2 + $0x10] ss:$20 sps:$4 sm:$0xff]   ;;  %v4999_v26 = vld [vmem:[#allocation4 + $0x94] ss:$12 sps:$4 sm:$0xff]  }
  0xc7   :  { %v4947_v29 = vld [vmem:[#allocation2 + $0x290] ss:$20 sps:$4 sm:$0xff]  }
  0xc9   :  { %1784 = vmatpush1.bf16.msra.mxu0 %v4852_v30  ;;  %1948 = vmatpush1.bf16.msra.mxu1 %v4855_v31  ;;  %v4932_v30 = vld [vmem:[#allocation2 + $0x178] ss:$20 sps:$4 sm:$0xff]  }
  0xca   :  { %1785 = vmatprep.subr.bf16.mxu0 %v4860_v33  ;;  %1949 = vmatprep.subr.bf16.mxu1 %v4863_v34  ;;  %v4949_v31 = vld [vmem:[#allocation2 + $0x3f8] ss:$20 sps:$4 sm:$0xff]   ;;  %v4934_v34 = vld [vmem:[#allocation2 + $0x1a0] ss:$20 sps:$4 sm:$0xff]  }
  0xcb   :  { %v4933_v33 = vld [vmem:[#allocation2 + $0x38] ss:$20 sps:$4 sm:$0xff]  }
  0xcd   :  { %1786 = vmatpush1.bf16.msra.mxu0 %v4858_v35  ;;  %1950 = vmatpush1.bf16.msra.mxu1 %v4861_v36  ;;  %v4951_v35 = vld [vmem:[#allocation2 + $0x2b8] ss:$20 sps:$4 sm:$0xff]   ;;  %v4953_v36 = vld [vmem:[#allocation2 + $0x420] ss:$20 sps:$4 sm:$0xff]  }
  0xce   :  { %1787 = vmatprep.subr.bf16.mxu0 %v4866_v37  ;;  %1951 = vmatprep.subr.bf16.mxu1 %v4869_v38  ;;  %v4935_v37 = vld [vmem:[#allocation2 + $0x60] ss:$20 sps:$4 sm:$0xff]   ;;  %v4936_v38 = vld [vmem:[#allocation2 + $0x1c8] ss:$20 sps:$4 sm:$0xff]  }
  0xd1   :  { %1788 = vmatpush1.bf16.msra.mxu0 %v4864_v39  ;;  %1952 = vmatpush1.bf16.msra.mxu1 %v4867_v40  ;;  %v4955_v39 = vld [vmem:[#allocation2 + $0x2e0] ss:$20 sps:$4 sm:$0xff]   ;;  %v4957_v40 = vld [vmem:[#allocation2 + $0x448] ss:$20 sps:$4 sm:$0xff]  }
  0xd2   :  { %1789 = vmatprep.subr.bf16.mxu0 %v4872_v41  ;;  %1953 = vmatprep.subr.bf16.mxu1 %v4875_v42  ;;  %v4937_v41 = vld [vmem:[#allocation2 + $0x88] ss:$20 sps:$4 sm:$0xff]  }
  0xd3   :  { %v4959_v42 = vld [vmem:[#allocation2 + $0x308] ss:$20 sps:$4 sm:$0xff]  }
  0xd5   :  { %1790 = vmatpush1.bf16.msra.mxu0 %v4870_v43  ;;  %1954 = vmatpush1.bf16.msra.mxu1 %v4873_v44  ;;  %v4938_v43 = vld [vmem:[#allocation2 + $0x1f0] ss:$20 sps:$4 sm:$0xff]  }
  0xd6   :  { %1791 = vmatprep.subr.bf16.mxu0 %v4878_v45  ;;  %1955 = vmatprep.subr.bf16.mxu1 %v4881_v46  ;;  %v4961_v44 = vld [vmem:[#allocation2 + $0x470] ss:$20 sps:$4 sm:$0xff]   ;;  %v4940_v46 = vld [vmem:[#allocation2 + $0x218] ss:$20 sps:$4 sm:$0xff]  }
  0xd7   :  { %v4963_v45 = vld [vmem:[#allocation2 + $0x330] ss:$20 sps:$4 sm:$0xff]  }
  0xd9   :  { %1792 = vmatpush1.bf16.msra.mxu0 %v4876_v47  ;;  %1956 = vmatpush1.bf16.msra.mxu1 %v4879_v49  ;;  %v4965_v47 = vld [vmem:[#allocation2 + $0x498] ss:$20 sps:$4 sm:$0xff]  }
  0xda   :  { %1793 = vmatprep.subr.bf16.mxu0 %v4884_v50  ;;  %1957 = vmatprep.subr.bf16.mxu1 %v4887_v51  ;;  %v4967_v49 = vld [vmem:[#allocation2 + $0x358] ss:$20 sps:$4 sm:$0xff]   ;;  %v4942_v50 = vld [vmem:[#allocation2 + $0x240] ss:$20 sps:$4 sm:$0xff]  }
  0xdb   :  { %v4969_v51 = vld [vmem:[#allocation2 + $0x4c0] ss:$20 sps:$4 sm:$0xff]  }
  0xdd   :  { %1794 = vmatpush1.bf16.msra.mxu0 %v4882_v52  ;;  %1958 = vmatpush1.bf16.msra.mxu1 %v4885_v53  ;;  %v4943_v52 = vld [vmem:[#allocation2 + $0x100] ss:$20 sps:$4 sm:$0xff]  }
  0xde   :  { %1795 = vmatprep.subr.bf16.mxu0 %v4890_v54  ;;  %1959 = vmatprep.subr.bf16.mxu1 %v4893_v55  ;;  %v4971_v53 = vld [vmem:[#allocation2 + $0x380] ss:$20 sps:$4 sm:$0xff]   ;;  %v4944_v54 = vld [vmem:[#allocation2 + $0x268] ss:$20 sps:$4 sm:$0xff]  }
  0xdf   :  { %v4973_v55 = vld [vmem:[#allocation2 + $0x4e8] ss:$20 sps:$4 sm:$0xff]  }
  0xe1   :  { %1796 = vmatpush1.bf16.msra.mxu0 %v4888_v56  ;;  %1960 = vmatpush1.bf16.msra.mxu1 %v4891_v57  ;;  %v4945_v56 = vld [vmem:[#allocation2 + $0x128] ss:$20 sps:$4 sm:$0xff]  }
  0xe2   :  { %1797 = vmatprep.subr.bf16.mxu0 %v4896_v58  ;;  %1961 = vmatprep.subr.bf16.mxu1 %v4899_v59  ;;  %v4975_v57 = vld [vmem:[#allocation2 + $0x3a8] ss:$20 sps:$4 sm:$0xff]   ;;  %v4948_v58 = vld [vmem:[#allocation2 + $0x650] ss:$20 sps:$4 sm:$0xff]  }
  0xe3   :  { %v4950_v59 = vld [vmem:[#allocation2 + $0x510] ss:$20 sps:$4 sm:$0xff]  }
  0xe5   :  { %1798 = vmatpush1.bf16.msra.mxu0 %v4894_v60  ;;  %1962 = vmatpush1.bf16.msra.mxu1 %v4897_v61  ;;  %v4952_v60 = vld [vmem:[#allocation2 + $0x678] ss:$20 sps:$4 sm:$0xff]   ;;  %v4978_v61 = vld [vmem:[#allocation2 + $0x790] ss:$20 sps:$4 sm:$0xff]  }
  0xe6   :  { %1799 = vmatprep.subr.bf16.mxu0 %v4902_v62  ;;  %1963 = vmatprep.subr.bf16.mxu1 %v4905_v63  ;;  %v4981_v62 = vld [vmem:[#allocation4 + $0x4] ss:$12 sps:$4 sm:$0xff]   ;;  %v5315_v63 = vmov 0.0  }
  0xe9   :  { %1800 = vmatpush1.bf16.msra.mxu0 %v4900_v0  ;;  %1964 = vmatpush1.bf16.msra.mxu1 %v4903_v1  ;;  %v4954_v0 = vld [vmem:[#allocation2 + $0x538] ss:$20 sps:$4 sm:$0xff]   ;;  %v4956_v1 = vld [vmem:[#allocation2 + $0x6a0] ss:$20 sps:$4 sm:$0xff]  }
  0xea   :  { %1801 = vmatprep.subr.bf16.mxu0 %v4908_v2  ;;  %1965 = vmatprep.subr.bf16.mxu1 %v4911_v3  ;;  %v4958_v2 = vld [vmem:[#allocation2 + $0x560] ss:$20 sps:$4 sm:$0xff]  }
  0xeb   :  { %v4979_v3 = vld [vmem:[#allocation4] ss:$12 sps:$4 sm:$0xff]  }
  0xed   :  { %1802 = vmatpush1.bf16.msra.mxu0 %v4906_v4  ;;  %1966 = vmatpush1.bf16.msra.mxu1 %v4909_v6  ;;  %v4960_v4 = vld [vmem:[#allocation2 + $0x6c8] ss:$20 sps:$4 sm:$0xff]   ;;  %v4984_v6 = vld [vmem:[#allocation4 + $0x1c] ss:$12 sps:$4 sm:$0xff]  }
  0xee   :  { %1803 = vmatprep.subr.bf16.mxu0 %v4914_v7  ;;  %1967 = vmatprep.subr.bf16.mxu1 %v4917_v8  ;;  %v4982_v7 = vld [vmem:[#allocation4 + $0x18] ss:$12 sps:$4 sm:$0xff]   ;;  %v4964_v8 = vld [vmem:[#allocation2 + $0x6f0] ss:$20 sps:$4 sm:$0xff]  }
  0xf1   :  { %1804 = vmatpush1.bf16.msra.mxu0 %v4912_v9  ;;  %1968 = vmatpush1.bf16.msra.mxu1 %v4915_v10  ;;  %v4985_v9 = vld [vmem:[#allocation4 + $0x30] ss:$12 sps:$4 sm:$0xff]  }
  0xf2   :  { %1805 = vmatprep.subr.bf16.mxu0 %v4920_v11  ;;  %1969 = vmatprep.subr.bf16.mxu1 %v4923_v13  ;;  %v4968_v10 = vld [vmem:[#allocation2 + $0x718] ss:$20 sps:$4 sm:$0xff]   ;;  %v4990_v11 = vld [vmem:[#allocation4 + $0x4c] ss:$12 sps:$4 sm:$0xff]  }
  0xf3   :  { %v4970_v13 = vld [vmem:[#allocation2 + $0x5d8] ss:$20 sps:$4 sm:$0xff]  }
  0xf5   :  { %1806 = vmatpush1.bf16.msra.mxu0 %v4918_v14  ;;  %1970 = vmatpush1.bf16.msra.mxu1 %v4921_v15  ;;  %v4988_v14 = vld [vmem:[#allocation4 + $0x48] ss:$12 sps:$4 sm:$0xff]   ;;  %v4972_v15 = vld [vmem:[#allocation2 + $0x740] ss:$20 sps:$4 sm:$0xff]  }
  0xf6   :  { %1816 = vmatprep.subr.bf16.mxu0 %v4926_v18  ;;  %1980 = vmatprep.subr.bf16.mxu1 %v4929_v19  ;;  %v4974_v18 = vld [vmem:[#allocation2 + $0x600] ss:$20 sps:$4 sm:$0xff]  }
  0xf7   :  { %v4991_v19 = vld [vmem:[#allocation4 + $0x60] ss:$12 sps:$4 sm:$0xff]  }
  0xf8   :  { %1808 = vmatmul.mubr.bf16.vlgmr.msra.gmra.mrb[0].mxu0 %v5451_v20  ;;  %1972 = vmatmul.mubr.bf16.vlgmr.msra.gmra.mrb[0].mxu1 %v5451_v20 }
  0xf9   :  { %1817 = vmatpush1.bf16.msra.mxu0 %v4924_v21  ;;  %1981 = vmatpush1.bf16.msra.mxu1 %v4927_v22  ;;  %v4976_v21 = vld [vmem:[#allocation2 + $0x768] ss:$20 sps:$4 sm:$0xff]   ;;  %v4996_v22 = vld [vmem:[#allocation4 + $0x7c] ss:$12 sps:$4 sm:$0xff]  }
  0xfa   :  { %1848 = vmatprep.mubr.bf16.mxu0 %v5314_v25  ;;  %2012 = vmatprep.mubr.bf16.mxu1 %v5314_v25 }
  0xfb   :  { %4382 = vmatprep.subr.bf16.mxu0 %v4930_v23  ;;  %4404 = vmatprep.subr.bf16.mxu1 %v4946_v24  ;;  %v4977_v23 = vld [vmem:[#allocation2 + $0x628] ss:$20 sps:$4 sm:$0xff]   ;;  %v4994_v24 = vld [vmem:[#allocation4 + $0x78] ss:$12 sps:$4 sm:$0xff]  }
 0x104   :  { %4185 = vmatmul.mubr.msk.bf16.vlgmr.msra.gmra.mrb[0].mxu0 %vm1689_vm0, %v5460_v27  ;;  %4186 = vmatmul.mubr.msk.bf16.vlgmr.msra.gmra.mrb[0].mxu1 %vm1689_vm0, %v5460_v27 }
 0x105   :  { %4383 = vmatpush3.bf16.msra.mxu0 %v4931_v28  ;;  %4405 = vmatpush3.bf16.msra.mxu1 %v4947_v29  ;;  %v4997_v28 = vld [vmem:[#allocation4 + $0x90] ss:$12 sps:$4 sm:$0xff]   ;;  %v5007_v29 = vld [vmem:[#allocation4 + $0x8] ss:$12 sps:$4 sm:$0xff]  }
 0x106   :  { %4384 = vmatprep.subr.bf16.mxu0 %v4932_v30  ;;  %2053 = vmatprep.mubr.bf16.mxu0 %v5416_v48  ;;  %v4939_v48 = vld [vmem:[#allocation2 + $0xb0] ss:$20 sps:$4 sm:$0xff]   ;;  %v5002_v30 = vld [vmem:[#allocation4 + $0xac] ss:$12 sps:$4 sm:$0xff]  }
 0x107   :  { %4406 = vmatprep.subr.bf16.mxu1 %v4949_v31  ;;  %2093 = vmatprep.mubr.bf16.mxu1 %v5430_v32  ;;  %v4941_v32 = vld [vmem:[#allocation2 + $0xd8] ss:$20 sps:$4 sm:$0xff]   ;;  %v5011_v31 = vld [vmem:[#allocation4 + $0xe0] ss:$12 sps:$4 sm:$0xff]  }
 0x109   :  { %4385 = vmatpush3.bf16.msra.mxu0 %v4933_v33  ;;  %4407 = vmatpush3.bf16.msra.mxu1 %v4951_v35  ;;  %v5000_v33 = vld [vmem:[#allocation4 + $0xa8] ss:$12 sps:$4 sm:$0xff]   ;;  %v5005_v35 = vld [vmem:[#allocation4 + $0xc4] ss:$12 sps:$4 sm:$0xff]  }
 0x10a   :  { %4386 = vmatprep.subr.bf16.mxu0 %v4934_v34  ;;  %4408 = vmatprep.subr.bf16.mxu1 %v4953_v36  ;;  %v5012_v34 = vld [vmem:[#allocation4 + $0x20] ss:$12 sps:$4 sm:$0xff]   ;;  %v5016_v36 = vld [vmem:[#allocation4 + $0xf8] ss:$12 sps:$4 sm:$0xff]  }
 0x10d   :  { %4387 = vmatpush3.bf16.msra.mxu0 %v4935_v37  ;;  %4409 = vmatpush3.bf16.msra.mxu1 %v4955_v39  ;;  %v5003_v37 = vld [vmem:[#allocation4 + $0xc0] ss:$12 sps:$4 sm:$0xff]   ;;  %v5010_v39 = vld [vmem:[#allocation4 + $0xdc] ss:$12 sps:$4 sm:$0xff]  }
 0x10e   :  { %4388 = vmatprep.subr.bf16.mxu0 %v4936_v38  ;;  %4410 = vmatprep.subr.bf16.mxu1 %v4957_v40  ;;  %v5017_v38 = vld [vmem:[#allocation4 + $0x38] ss:$12 sps:$4 sm:$0xff]   ;;  %v5021_v40 = vld [vmem:[#allocation4 + $0x110] ss:$12 sps:$4 sm:$0xff]  }
 0x111   :  { %4389 = vmatpush3.bf16.msra.mxu0 %v4937_v41  ;;  %4411 = vmatpush3.bf16.msra.mxu1 %v4959_v42  ;;  %v5008_v41 = vld [vmem:[#allocation4 + $0xd8] ss:$12 sps:$4 sm:$0xff]   ;;  %v5022_v42 = vld [vmem:[#allocation4 + $0x50] ss:$12 sps:$4 sm:$0xff]  }
 0x112   :  { %4390 = vmatprep.subr.bf16.mxu0 %v4938_v43  ;;  %4412 = vmatprep.subr.bf16.mxu1 %v4961_v44  ;;  %v5026_v43 = vld [vmem:[#allocation4 + $0x128] ss:$12 sps:$4 sm:$0xff]   ;;  %v5013_v44 = vld [vmem:[#allocation4 + $0xf0] ss:$12 sps:$4 sm:$0xff]  }
 0x115   :  { %4391 = vmatpush3.bf16.msra.mxu0 %v4939_v48  ;;  %4413 = vmatpush3.bf16.msra.mxu1 %v4963_v45  ;;  %v5027_v48 = vld [vmem:[#allocation4 + $0x68] ss:$12 sps:$4 sm:$0xff]   ;;  %v5020_v45 = vld [vmem:[#allocation4 + $0x10c] ss:$12 sps:$4 sm:$0xff]  }
 0x116   :  { %4392 = vmatprep.subr.bf16.mxu0 %v4940_v46  ;;  %4414 = vmatprep.subr.bf16.mxu1 %v4965_v47  ;;  %v5031_v46 = vld [vmem:[#allocation4 + $0x140] ss:$12 sps:$4 sm:$0xff]   ;;  %v5018_v47 = vld [vmem:[#allocation4 + $0x108] ss:$12 sps:$4 sm:$0xff]  }
 0x119   :  { %4393 = vmatpush3.bf16.msra.mxu0 %v4941_v32  ;;  %4415 = vmatpush3.bf16.msra.mxu1 %v4967_v49  ;;  %v5032_v32 = vld [vmem:[#allocation4 + $0x80] ss:$12 sps:$4 sm:$0xff]   ;;  %v5025_v49 = vld [vmem:[#allocation4 + $0x124] ss:$12 sps:$4 sm:$0xff]  }
 0x11a   :  { %4394 = vmatprep.subr.bf16.mxu0 %v4942_v50  ;;  %4416 = vmatprep.subr.bf16.mxu1 %v4969_v51  ;;  %v5036_v50 = vld [vmem:[#allocation4 + $0x158] ss:$12 sps:$4 sm:$0xff]   ;;  %v5023_v51 = vld [vmem:[#allocation4 + $0x120] ss:$12 sps:$4 sm:$0xff]  }
 0x11d   :  { %4395 = vmatpush3.bf16.msra.mxu0 %v4943_v52  ;;  %4417 = vmatpush3.bf16.msra.mxu1 %v4971_v53  ;;  %v5037_v52 = vld [vmem:[#allocation4 + $0x98] ss:$12 sps:$4 sm:$0xff]   ;;  %v5030_v53 = vld [vmem:[#allocation4 + $0x13c] ss:$12 sps:$4 sm:$0xff]  }
 0x11e   :  { %4396 = vmatprep.subr.bf16.mxu0 %v4944_v54  ;;  %4418 = vmatprep.subr.bf16.mxu1 %v4973_v55  ;;  %v5041_v54 = vld [vmem:[#allocation4 + $0x170] ss:$12 sps:$4 sm:$0xff]   ;;  %v5028_v55 = vld [vmem:[#allocation4 + $0x138] ss:$12 sps:$4 sm:$0xff]  }
 0x121   :  { %4397 = vmatpush3.bf16.msra.mxu0 %v4945_v56  ;;  %4419 = vmatpush3.bf16.msra.mxu1 %v4975_v57  ;;  %v5042_v56 = vld [vmem:[#allocation4 + $0xb0] ss:$12 sps:$4 sm:$0xff]   ;;  %v5035_v57 = vld [vmem:[#allocation4 + $0x154] ss:$12 sps:$4 sm:$0xff]  }
 0x122   :  { %4426 = vmatprep.subr.bf16.mxu0 %v4948_v58  ;;  %4534 = vmatprep.subr.bf16.mxu1 %v5315_v63  ;;  %v5046_v58 = vld [vmem:[#allocation4 + $0x248] ss:$12 sps:$4 sm:$0xff]  }
 0x124   :  { %2054 = vmatmul.mubr.bf16.vlgmr.msra.gmra.mrb[4].mxu0 %v5423_v5  ;;  %2094 = vmatmul.mubr.bf16.vlgmr.msra.gmra.mrb[4].mxu1 %v5437_v12  ;;  %v4962_v5 = vld [vmem:[#allocation2 + $0x588] ss:$20 sps:$4 sm:$0xff]  }
 0x125   :  { %4427 = vmatpush3.bf16.msra.mxu0 %v4950_v59  ;;  %2133 = vmatprep.mubr.bf16.mxu0 %v5442_v17  ;;  %v4987_v12 = vld [vmem:[#allocation4 + $0x34] ss:$12 sps:$4 sm:$0xff]   ;;  %v4966_v17 = vld [vmem:[#allocation2 + $0x5b0] ss:$20 sps:$4 sm:$0xff]  }
 0x126   :  { %4428 = vmatprep.subr.bf16.mxu0 %v4952_v60  ;;  %4535 = vmatpush3.bf16.msra.mxu1 %v4978_v61  ;;  %v5033_v59 = vld [vmem:[#allocation4 + $0x150] ss:$12 sps:$4 sm:$0xff]   ;;  %v5040_v60 = vld [vmem:[#allocation4 + $0x16c] ss:$12 sps:$4 sm:$0xff]   ;;  %v5038_v61 = vld [vmem:[#allocation4 + $0x168] ss:$12 sps:$4 sm:$0xff]  }
 0x127   :  { %4536 = vmatprep.mubr.msk.bf16.mxu1 %vm5316_vm1, %v5315_v63  ;;  %3008 = vmatprep.subr.bf16.mxu1 %v4981_v62  ;;  %v5045_v62 = vld [vmem:[#allocation4 + $0x184] ss:$12 sps:$4 sm:$0xff]  }
 0x129   :  { %4429 = vmatpush3.bf16.msra.mxu0 %v4954_v0  ;;  %v390_v0 = vlaneseq }
 0x12a   :  { %4430 = vmatprep.subr.bf16.mxu0 %v4956_v1 }
 0x12b   :  { %v5477_v1 = vshrl.u32 %v390_v0, 7 }
 0x12c   :  { %4537 = vmatmul.mubr.msk.bf16.vlgmr.msra.gmra.mrb[8].mxu1 %vm1689_vm0, %v5460_v27  ;;  %v5006_v27 = vld [vmem:[#allocation4 + $0xc8] ss:$12 sps:$4 sm:$0xff]  }
 0x12d   :  { %4431 = vmatpush3.bf16.msra.mxu0 %v4958_v2  ;;  %3009 = vmatpush1.bf16.msra.mxu1 %v4979_v3  ;;  %v5480_v2 = vsub.s32 0, %v5477_v1  ;;  %v5485_v3 = vld [vmem:[%s5629_s2] sm:$0x1f] }
 0x12e   :  { %4432 = vmatprep.subr.bf16.mxu0 %v4960_v4  ;;  %3010 = vmatprep.subr.bf16.mxu1 %v4984_v6  ;;  %v5488_v4 = vsub.s32 1, %v5477_v1  ;;  %v404_v6 = vsub.s32 3, %v5477_v1 }
 0x131   :  { %4433 = vmatpush3.bf16.msra.mxu0 %v4962_v5  ;;  %3011 = vmatpush1.bf16.msra.mxu1 %v4982_v7  ;;  %v393_v5 = vrot.slane %v5485_v3, %v5480_v2  ;;  %v397_v7 = vrot.slane %v5485_v3, %v5488_v4 }
 0x132   :  { %4434 = vmatprep.subr.bf16.mxu0 %v4964_v8  ;;  %3012 = vmatprep.subr.bf16.mxu1 %v4987_v12  ;;  %v405_v8 = vrot.slane %v5485_v3, %v404_v6  ;;  %v5078_v6 = vld [vmem:[#allocation4 + $0x228] ss:$12 sps:$4 sm:$0xff]  }
 0x135   :  { %4435 = vmatpush3.bf16.msra.mxu0 %v4966_v17  ;;  %3013 = vmatpush1.bf16.msra.mxu1 %v4985_v9 }
 0x136   :  { %4436 = vmatprep.subr.bf16.mxu0 %v4968_v10  ;;  %3014 = vmatprep.subr.bf16.mxu1 %v4990_v11 }
 0x139   :  { %4437 = vmatpush3.bf16.msra.mxu0 %v4970_v13  ;;  %3015 = vmatpush1.bf16.msra.mxu1 %v4988_v14 }
 0x13a   :  { %4438 = vmatprep.subr.bf16.mxu0 %v4972_v15  ;;  %3016 = vmatprep.subr.bf16.mxu1 %v4993_v16 }
 0x13d   :  { %4439 = vmatpush3.bf16.msra.mxu0 %v4974_v18  ;;  %3017 = vmatpush1.bf16.msra.mxu1 %v4991_v19 }
 0x13e   :  { %4440 = vmatprep.subr.bf16.mxu0 %v4976_v21  ;;  %3018 = vmatprep.subr.bf16.mxu1 %v4996_v22 }
 0x141   :  { %4441 = vmatpush3.bf16.msra.mxu0 %v4977_v23  ;;  %3019 = vmatpush1.bf16.msra.mxu1 %v4994_v24 }
 0x142   :  { %3020 = vmatprep.subr.bf16.mxu1 %v4999_v26  ;;  %4450 = vmatprep.subr.bf16.mxu0 %v5006_v27  ;;  %v5043_v26 = vld [vmem:[#allocation4 + $0x180] ss:$12 sps:$4 sm:$0xff]   ;;  %v5047_v27 = vld [vmem:[#allocation4 + $0x188] ss:$12 sps:$4 sm:$0xff]  }
 0x144   :  { %2134 = vmatmul.mubr.bf16.vlgmr.msra.gmra.mrb[8].mxu0 %v5451_v20  ;;  %v5015_v20 = vld [vmem:[#allocation4 + $0xf4] ss:$12 sps:$4 sm:$0xff]  }
 0x145   :  { %3021 = vmatpush1.bf16.msra.mxu1 %v4997_v28  ;;  %4451 = vmatpush3.bf16.msra.mxu0 %v5007_v29  ;;  %v5050_v29 = vld [vmem:[#allocation4 + $0x19c] ss:$12 sps:$4 sm:$0xff]  }
 0x146   :  { %3022 = vmatprep.subr.bf16.mxu1 %v5002_v30  ;;  %4452 = vmatprep.subr.bf16.mxu0 %v5011_v31  ;;  %v5051_v30 = vld [vmem:[#allocation4 + $0x260] ss:$12 sps:$4 sm:$0xff]  }
 0x149   :  { %3023 = vmatpush1.bf16.msra.mxu1 %v5000_v33  ;;  %4453 = vmatpush3.bf16.msra.mxu0 %v5012_v34  ;;  %v5048_v33 = vld [vmem:[#allocation4 + $0x198] ss:$12 sps:$4 sm:$0xff]   ;;  %v5052_v34 = vld [vmem:[#allocation4 + $0x1a0] ss:$12 sps:$4 sm:$0xff]  }
 0x14a   :  { %3024 = vmatprep.subr.bf16.mxu1 %v5005_v35  ;;  %4454 = vmatprep.subr.bf16.mxu0 %v5016_v36  ;;  %v5055_v35 = vld [vmem:[#allocation4 + $0x1b4] ss:$12 sps:$4 sm:$0xff]   ;;  %v5056_v36 = vld [vmem:[#allocation4 + $0x278] ss:$12 sps:$4 sm:$0xff]  }
 0x14d   :  { %3025 = vmatpush1.bf16.msra.mxu1 %v5003_v37  ;;  %4455 = vmatpush3.bf16.msra.mxu0 %v5017_v38  ;;  %v5053_v37 = vld [vmem:[#allocation4 + $0x1b0] ss:$12 sps:$4 sm:$0xff]   ;;  %v5057_v38 = vld [vmem:[#allocation4 + $0x1b8] ss:$12 sps:$4 sm:$0xff]  }
 0x14e   :  { %3026 = vmatprep.subr.bf16.mxu1 %v5010_v39  ;;  %4456 = vmatprep.subr.bf16.mxu0 %v5021_v40  ;;  %v5060_v39 = vld [vmem:[#allocation4 + $0x1cc] ss:$12 sps:$4 sm:$0xff]   ;;  %v5061_v40 = vld [vmem:[#allocation4 + $0x290] ss:$12 sps:$4 sm:$0xff]  }
 0x151   :  { %3027 = vmatpush1.bf16.msra.mxu1 %v5008_v41  ;;  %4457 = vmatpush3.bf16.msra.mxu0 %v5022_v42  ;;  %v5058_v41 = vld [vmem:[#allocation4 + $0x1c8] ss:$12 sps:$4 sm:$0xff]   ;;  %v5062_v42 = vld [vmem:[#allocation4 + $0x1d0] ss:$12 sps:$4 sm:$0xff]  }
 0x152   :  { %3028 = vmatprep.subr.bf16.mxu1 %v5015_v20  ;;  %4458 = vmatprep.subr.bf16.mxu0 %v5026_v43  ;;  %v5065_v20 = vld [vmem:[#allocation4 + $0x1e4] ss:$12 sps:$4 sm:$0xff]   ;;  %v5066_v43 = vld [vmem:[#allocation4 + $0x2a8] ss:$12 sps:$4 sm:$0xff]  }
 0x155   :  { %3029 = vmatpush1.bf16.msra.mxu1 %v5013_v44  ;;  %4459 = vmatpush3.bf16.msra.mxu0 %v5027_v48  ;;  %v5063_v44 = vld [vmem:[#allocation4 + $0x1e0] ss:$12 sps:$4 sm:$0xff]   ;;  %v5067_v48 = vld [vmem:[#allocation4 + $0x1e8] ss:$12 sps:$4 sm:$0xff]  }
 0x156   :  { %3030 = vmatprep.subr.bf16.mxu1 %v5020_v45  ;;  %4460 = vmatprep.subr.bf16.mxu0 %v5031_v46  ;;  %v400_v45 = vsub.s32 2, %v5477_v1  ;;  %v5070_v46 = vld [vmem:[#allocation4 + $0x1fc] ss:$12 sps:$4 sm:$0xff]  }
 0x159   :  { %3031 = vmatpush1.bf16.msra.mxu1 %v5018_v47  ;;  %4461 = vmatpush3.bf16.msra.mxu0 %v5032_v32  ;;  %v5071_v47 = vld [vmem:[#allocation4 + $0x2c0] ss:$12 sps:$4 sm:$0xff]   ;;  %v5068_v32 = vld [vmem:[#allocation4 + $0x1f8] ss:$12 sps:$4 sm:$0xff]  }
 0x15a   :  { %3032 = vmatprep.subr.bf16.mxu1 %v5025_v49  ;;  %4462 = vmatprep.subr.bf16.mxu0 %v5036_v50  ;;  %v5072_v49 = vld [vmem:[#allocation4 + $0x200] ss:$12 sps:$4 sm:$0xff]   ;;  %v401_v50 = vrot.slane %v5485_v3, %v400_v45 }
 0x15d   :  { %3033 = vmatpush1.bf16.msra.mxu1 %v5023_v51  ;;  %4463 = vmatpush3.bf16.msra.mxu0 %v5037_v52  ;;  %v5075_v51 = vld [vmem:[#allocation4 + $0x214] ss:$12 sps:$4 sm:$0xff]   ;;  %v5076_v52 = vld [vmem:[#allocation4 + $0x2d8] ss:$12 sps:$4 sm:$0xff]  }
 0x15e   :  { %3034 = vmatprep.subr.bf16.mxu1 %v5030_v53  ;;  %4464 = vmatprep.subr.bf16.mxu0 %v5041_v54  ;;  %v408_v53 = vsub.s32 4, %v5477_v1  ;;  %v5073_v54 = vld [vmem:[#allocation4 + $0x210] ss:$12 sps:$4 sm:$0xff]  }
 0x161   :  { %3035 = vmatpush1.bf16.msra.mxu1 %v5028_v55  ;;  %4465 = vmatpush3.bf16.msra.mxu0 %v5042_v56  ;;  %v5077_v55 = vld [vmem:[#allocation4 + $0x218] ss:$12 sps:$4 sm:$0xff]  }
 0x162   :  { %3036 = vmatprep.subr.bf16.mxu1 %v5035_v57  ;;  %4472 = vmatprep.subr.bf16.mxu0 %v5046_v58  ;;  %v5080_v57 = vld [vmem:[#allocation4 + $0x22c] ss:$12 sps:$4 sm:$0xff]   ;;  %v5081_v58 = vld [vmem:[#allocation4 + $0x2f0] ss:$12 sps:$4 sm:$0xff]  }
 0x165   :  { %3037 = vmatpush1.bf16.msra.mxu1 %v5033_v59 }
 0x166   :  { %3038 = vmatprep.subr.bf16.mxu1 %v5040_v60  ;;  %v409_v60 = vrot.slane %v5485_v3, %v408_v53  ;;  %v5083_v3 = vld [vmem:[#allocation4 + $0x240] ss:$12 sps:$4 sm:$0xff]  }
 0x169   :  { %3039 = vmatpush1.bf16.msra.mxu1 %v5038_v61 }
 0x16a   :  { %3049 = vmatprep.subr.bf16.mxu1 %v5045_v62 }
 0x1d7   :  { %v1850_v12 = vpop.f32.mrb[0].mxu0  ;;  %v5496_v17 = vpop.f32.mrb[0].mxu1 }
 0x1d8   :  { %v4580_v9 = vadd.f32 %v1850_v12, %v393_v5  ;;  %v1852_v10 = vpop.f32.mrb[1].mxu0  ;;  %v2016_v11 = vpop.f32.mrb[1].mxu1  ;;  %v4582_v56 = vadd.f32 %v5496_v17, %v401_v50  ;;  %v5082_v5 = vld [vmem:[#allocation4 + $0x230] ss:$12 sps:$4 sm:$0xff]  }
 0x1d9   :  { %v4581_v13 = vadd.f32 %v1852_v10, %v397_v7  ;;  %v4583_v14 = vadd.f32 %v2016_v11, %v405_v8  ;;  %v1854_v15 = vpop.f32.mrb[2].mxu0  ;;  %v2018_v16 = vpop.f32.mrb[2].mxu1  ;;  %v5085_v17 = vld [vmem:[#allocation4 + $0x244] ss:$12 sps:$4 sm:$0xff]  }
 0x1da   :  { %v2181_v18 = vmax.f32 %v4580_v9, 0.0  ;;  %v1855_v19 = vpop.f32.mrb[3].mxu0  ;;  %v2019_v21 = vpop.f32.mrb[3].mxu1  ;;  %v2183_v10 = vmax.f32 %v4582_v56, 0.0  ;;  %v5089_v15 = vld [vmem:[#allocation4 + $0x308] ss:$12 sps:$4 sm:$0xff]  }
 0x1db   :  { %v2182_v22 = vmax.f32 %v4581_v13, 0.0  ;;  %v2184_v23 = vmax.f32 %v4583_v14, 0.0  ;;  %v5088_v19 = vld [vmem:[#allocation4 + $0x25c] ss:$12 sps:$4 sm:$0xff]   ;;  %v5116_v50 = vld [vmem:[#allocation4 + $0x304] ss:$12 sps:$4 sm:$0xff]  }
 0x1dc   :  { %v2186_v28 = vpack.c.bf16 %v2181_v18, %v2181_v18  ;;  %v5507_v18 = vpack.c.bf16 %v2183_v10, %v2183_v10  ;;  %v5136_v10 = vld [vmem:[#allocation4 + $0x3a8] ss:$12 sps:$4 sm:$0xff]  }
 0x1dd   :  { %v2187_v24 = vpack.c.bf16 %v2182_v22, %v2182_v22  ;;  %v2189_v31 = vpack.c.bf16 %v2184_v23, %v2184_v23  ;;  %v5086_v23 = vld [vmem:[#allocation4 + $0x258] ss:$12 sps:$4 sm:$0xff]  }
 0x1df   :  { %3040 = vmatprep.mubr.bf16.mxu1 %v2187_v24  ;;  %3163 = vmatprep.mubr.bf16.mxu0 %v2187_v24  ;;  %v5093_v24 = vld [vmem:[#allocation4 + $0x320] ss:$12 sps:$4 sm:$0xff]  }
 0x1e0   :  { %3041 = vmatmul.mubr.bf16.vlgmr.msra.gmra.mrb[12].mxu1 %v2186_v28  ;;  %3164 = vmatmul.mubr.bf16.vlgmr.msra.gmra.mrb[12].mxu0 %v2186_v28 }
 0x1e1   :  { %3050 = vmatpush1.bf16.msra.mxu1 %v5043_v26  ;;  %4473 = vmatpush3.bf16.msra.mxu0 %v5047_v27  ;;  %v5092_v27 = vld [vmem:[#allocation4 + $0x274] ss:$12 sps:$4 sm:$0xff]  }
 0x1e2   :  { %3081 = vmatprep.mubr.bf16.mxu1 %v2189_v31  ;;  %3203 = vmatprep.mubr.bf16.mxu0 %v2189_v31  ;;  %v5096_v31 = vld [vmem:[#allocation4 + $0x28c] ss:$12 sps:$4 sm:$0xff]  }
 0x1e3   :  { %3051 = vmatprep.subr.bf16.mxu1 %v5050_v29  ;;  %4474 = vmatprep.subr.bf16.mxu0 %v5051_v30  ;;  %v5090_v29 = vld [vmem:[#allocation4 + $0x270] ss:$12 sps:$4 sm:$0xff]   ;;  %v5097_v30 = vld [vmem:[#allocation4 + $0x338] ss:$12 sps:$4 sm:$0xff]  }
 0x1e5   :  { %3052 = vmatpush1.bf16.msra.mxu1 %v5048_v33  ;;  %4475 = vmatpush3.bf16.msra.mxu0 %v5052_v34  ;;  %v5094_v33 = vld [vmem:[#allocation4 + $0x288] ss:$12 sps:$4 sm:$0xff]   ;;  %v5101_v34 = vld [vmem:[#allocation4 + $0x350] ss:$12 sps:$4 sm:$0xff]  }
 0x1e6   :  { %3053 = vmatprep.subr.bf16.mxu1 %v5055_v35  ;;  %4476 = vmatprep.subr.bf16.mxu0 %v5056_v36  ;;  %v5100_v35 = vld [vmem:[#allocation4 + $0x2a4] ss:$12 sps:$4 sm:$0xff]   ;;  %v5098_v36 = vld [vmem:[#allocation4 + $0x2a0] ss:$12 sps:$4 sm:$0xff]  }
 0x1e9   :  { %3054 = vmatpush1.bf16.msra.mxu1 %v5053_v37  ;;  %4477 = vmatpush3.bf16.msra.mxu0 %v5057_v38  ;;  %v5105_v37 = vld [vmem:[#allocation4 + $0x368] ss:$12 sps:$4 sm:$0xff]  }
 0x1ea   :  { %3055 = vmatprep.subr.bf16.mxu1 %v5060_v39  ;;  %4478 = vmatprep.subr.bf16.mxu0 %v5061_v40  ;;  %v5104_v38 = vld [vmem:[#allocation4 + $0x2bc] ss:$12 sps:$4 sm:$0xff]   ;;  %v5102_v39 = vld [vmem:[#allocation4 + $0x2b8] ss:$12 sps:$4 sm:$0xff]   ;;  %v5109_v40 = vld [vmem:[#allocation4 + $0x380] ss:$12 sps:$4 sm:$0xff]  }
 0x1ed   :  { %3056 = vmatpush1.bf16.msra.mxu1 %v5058_v41  ;;  %4479 = vmatpush3.bf16.msra.mxu0 %v5062_v42  ;;  %v5108_v41 = vld [vmem:[#allocation4 + $0x2d4] ss:$12 sps:$4 sm:$0xff]   ;;  %v5106_v42 = vld [vmem:[#allocation4 + $0x2d0] ss:$12 sps:$4 sm:$0xff]  }
 0x1ee   :  { %3057 = vmatprep.subr.bf16.mxu1 %v5065_v20  ;;  %4480 = vmatprep.subr.bf16.mxu0 %v5066_v43  ;;  %v5113_v20 = vld [vmem:[#allocation4 + $0x398] ss:$12 sps:$4 sm:$0xff]  }
 0x1ef   :  { %v5112_v43 = vld [vmem:[#allocation4 + $0x2ec] ss:$12 sps:$4 sm:$0xff]  }
 0x1f1   :  { %3058 = vmatpush1.bf16.msra.mxu1 %v5063_v44  ;;  %4481 = vmatpush3.bf16.msra.mxu0 %v5067_v48 }
 0x1f2   :  { %3059 = vmatprep.subr.bf16.mxu1 %v5070_v46  ;;  %4482 = vmatprep.subr.bf16.mxu0 %v5071_v47  ;;  %v5110_v47 = vld [vmem:[#allocation4 + $0x2e8] ss:$12 sps:$4 sm:$0xff]  }
 0x1f5   :  { %3060 = vmatpush1.bf16.msra.mxu1 %v5068_v32  ;;  %4483 = vmatpush3.bf16.msra.mxu0 %v5072_v49  ;;  %v5117_v32 = vld [vmem:[#allocation4 + $0x3b0] ss:$12 sps:$4 sm:$0xff]  }
 0x1f6   :  { %3061 = vmatprep.subr.bf16.mxu1 %v5075_v51  ;;  %4484 = vmatprep.subr.bf16.mxu0 %v5076_v52 }
 0x1f7   :  { %v4398_v59 = vpop.f32.mrb[4].mxu0  ;;  %v4420_v61 = vpop.f32.mrb[4].mxu1 }
 0x1f8   :  { %v4399_v62 = vpop.f32.mrb[5].mxu0  ;;  %v4421_v0 = vpop.f32.mrb[5].mxu1 }
 0x1f9   :  { %3062 = vmatpush1.bf16.msra.mxu1 %v5073_v54  ;;  %4485 = vmatpush3.bf16.msra.mxu0 %v5077_v55  ;;  %v4400_v7 = vadd.f32 %v4399_v62, %v4398_v59  ;;  %v4401_v8 = vpop.f32.mrb[6].mxu0  ;;  %v4422_v12 = vadd.f32 %v4421_v0, %v4420_v61  ;;  %v4423_v9 = vpop.f32.mrb[6].mxu1  ;;  %v5114_v54 = vld [vmem:[#allocation4 + $0x300] ss:$12 sps:$4 sm:$0xff]   ;;  %v5120_v55 = vld [vmem:[#allocation4 + $0x31c] ss:$12 sps:$4 sm:$0xff]  }
 0x1fa   :  { %3063 = vmatprep.subr.bf16.mxu1 %v5080_v57  ;;  %4486 = vmatprep.subr.bf16.mxu0 %v5081_v58  ;;  %v4402_v11 = vpop.f32.mrb[7].mxu0  ;;  %v4424_v13 = vpop.f32.mrb[7].mxu1  ;;  %v5118_v58 = vld [vmem:[#allocation4 + $0x318] ss:$12 sps:$4 sm:$0xff]   ;;  %v5123_v59 = vld [vmem:[#allocation4 + $0x334] ss:$12 sps:$4 sm:$0xff]  }
 0x1fb   :  { %v2056_v14 = vadd.f32 %v4400_v7, %v409_v60  ;;  %v5121_v60 = vld [vmem:[#allocation4 + $0x330] ss:$12 sps:$4 sm:$0xff]   ;;  %v5126_v61 = vld [vmem:[#allocation4 + $0x34c] ss:$12 sps:$4 sm:$0xff]   ;;  %v5124_v62 = vld [vmem:[#allocation4 + $0x348] ss:$12 sps:$4 sm:$0xff]  }
 0x1fc   :  { %v5129_v0 = vld [vmem:[#allocation4 + $0x364] ss:$12 sps:$4 sm:$0xff]   ;;  %v5135_v8 = vld [vmem:[#allocation4 + $0x394] ss:$12 sps:$4 sm:$0xff]   ;;  %v5138_v9 = vld [vmem:[#allocation4 + $0x3ac] ss:$12 sps:$4 sm:$0xff]  }
 0x1fd   :  { %3064 = vmatpush1.bf16.msra.mxu1 %v5078_v6  ;;  %4487 = vmatpush3.bf16.msra.mxu0 %v5082_v5  ;;  %v5505_v16 = vadd.f32 %v4422_v12, %v2056_v14  ;;  %v5127_v6 = vld [vmem:[#allocation4 + $0x360] ss:$12 sps:$4 sm:$0xff]   ;;  %v5132_v5 = vld [vmem:[#allocation4 + $0x37c] ss:$12 sps:$4 sm:$0xff]   ;;  %v5130_v7 = vld [vmem:[#allocation4 + $0x378] ss:$12 sps:$4 sm:$0xff]  }
 0x1fe   :  { %3065 = vmatprep.subr.bf16.mxu1 %v5085_v17  ;;  %4540 = vmatprep.subr.bf16.mxu0 %v5315_v63  ;;  %v5133_v12 = vld [vmem:[#allocation4 + $0x390] ss:$12 sps:$4 sm:$0xff]   ;;  %v5139_v17 = vld [vmem:[#allocation6] ss:$8 sps:$4 sm:$0xff]   ;;  %v5141_v11 = vld [vmem:[#allocation6 + $0x4] ss:$8 sps:$4 sm:$0xff]  }
 0x1ff   :  { %v2175_v21 = vpop.f32.mrb[8].mxu1  ;;  %v5144_v13 = vld [vmem:[#allocation6 + $0x14] ss:$8 sps:$4 sm:$0xff]   ;;  %v5142_v14 = vld [vmem:[#allocation6 + $0x10] ss:$8 sps:$4 sm:$0xff]  }
 0x200   :  { %3204 = vmatmul.mubr.bf16.vlgmr.msra.gmra.mrb[16].mxu0 %v5507_v18  ;;  %v4538_v22 = vpop.f32.mrb[9].mxu1 }
 0x201   :  { %3066 = vmatpush1.bf16.msra.mxu1 %v5083_v3  ;;  %4541 = vmatpush3.bf16.msra.mxu0 %v5089_v15  ;;  %v2178_v26 = vpop.f32.mrb[10].mxu1  ;;  %v5147_v3 = vld [vmem:[#allocation6 + $0x24] ss:$8 sps:$4 sm:$0xff]   ;;  %v5145_v15 = vld [vmem:[#allocation6 + $0x20] ss:$8 sps:$4 sm:$0xff]  }
 0x202   :  { %3067 = vmatprep.subr.bf16.mxu1 %v5088_v19  ;;  %4542 = vmatprep.subr.bf16.mxu0 %v5315_v63  ;;  %v4539_v28 = vpop.f32.mrb[11].mxu1  ;;  %v5153_v19 = vld [vmem:[#allocation6 + $0x44] ss:$8 sps:$4 sm:$0xff]   ;;  %v5156_v22 = vld [vmem:[#allocation6 + $0x54] ss:$8 sps:$4 sm:$0xff]  }
 0x203   :  { %4556 = vmatprep.mubr.msk.bf16.mxu0 %vm5316_vm1, %v5315_v63  ;;  %v5157_v26 = vld [vmem:[#allocation6 + $0x60] ss:$8 sps:$4 sm:$0xff]   ;;  %v5160_v28 = vld [vmem:[#allocation6 + $0x70] ss:$8 sps:$4 sm:$0xff]  }
 0x205   :  { %3068 = vmatpush1.bf16.msra.mxu1 %v5086_v23  ;;  %4543 = vmatpush3.bf16.msra.mxu0 %v5093_v24  ;;  %v5154_v23 = vld [vmem:[#allocation6 + $0x50] ss:$8 sps:$4 sm:$0xff]   ;;  %v5159_v24 = vld [vmem:[#allocation6 + $0x64] ss:$8 sps:$4 sm:$0xff]  }
 0x206   :  { %3069 = vmatprep.subr.bf16.mxu1 %v5092_v27  ;;  %4544 = vmatprep.subr.bf16.mxu0 %v5315_v63  ;;  %v5162_v27 = vld [vmem:[#allocation6 + $0x74] ss:$8 sps:$4 sm:$0xff]  }
 0x209   :  { %3070 = vmatpush1.bf16.msra.mxu1 %v5090_v29  ;;  %4545 = vmatpush3.bf16.msra.mxu0 %v5097_v30  ;;  %v5165_v29 = vld [vmem:[#allocation6 + $0x84] ss:$8 sps:$4 sm:$0xff]   ;;  %v5163_v30 = vld [vmem:[#allocation6 + $0x80] ss:$8 sps:$4 sm:$0xff]  }
 0x20a   :  { %3071 = vmatprep.subr.bf16.mxu1 %v5096_v31  ;;  %4546 = vmatprep.subr.bf16.mxu0 %v5315_v63  ;;  %v5168_v31 = vld [vmem:[#allocation6 + $0x94] ss:$8 sps:$4 sm:$0xff]  }
 0x20d   :  { %3072 = vmatpush1.bf16.msra.mxu1 %v5094_v33  ;;  %4547 = vmatpush3.bf16.msra.mxu0 %v5101_v34  ;;  %v5166_v33 = vld [vmem:[#allocation6 + $0x90] ss:$8 sps:$4 sm:$0xff]   ;;  %v5171_v34 = vld [vmem:[#allocation6 + $0xa4] ss:$8 sps:$4 sm:$0xff]  }
 0x20e   :  { %3073 = vmatprep.subr.bf16.mxu1 %v5100_v35  ;;  %4548 = vmatprep.subr.bf16.mxu0 %v5315_v63  ;;  %v5169_v35 = vld [vmem:[#allocation6 + $0xa0] ss:$8 sps:$4 sm:$0xff]  }
 0x211   :  { %3074 = vmatpush1.bf16.msra.mxu1 %v5098_v36  ;;  %4549 = vmatpush3.bf16.msra.mxu0 %v5105_v37  ;;  %v5174_v36 = vld [vmem:[#allocation6 + $0xb4] ss:$8 sps:$4 sm:$0xff]   ;;  %v5172_v37 = vld [vmem:[#allocation6 + $0xb0] ss:$8 sps:$4 sm:$0xff]  }
 0x212   :  { %3075 = vmatprep.subr.bf16.mxu1 %v5104_v38  ;;  %4550 = vmatprep.subr.bf16.mxu0 %v5315_v63  ;;  %v5177_v38 = vld [vmem:[#allocation6 + $0xc4] ss:$8 sps:$4 sm:$0xff]  }
 0x215   :  { %3076 = vmatpush1.bf16.msra.mxu1 %v5102_v39  ;;  %4551 = vmatpush3.bf16.msra.mxu0 %v5109_v40  ;;  %v5175_v39 = vld [vmem:[#allocation6 + $0xc0] ss:$8 sps:$4 sm:$0xff]   ;;  %v5180_v40 = vld [vmem:[#allocation6 + $0xd4] ss:$8 sps:$4 sm:$0xff]  }
 0x216   :  { %3077 = vmatprep.subr.bf16.mxu1 %v5108_v41  ;;  %4552 = vmatprep.subr.bf16.mxu0 %v5315_v63  ;;  %v5178_v41 = vld [vmem:[#allocation6 + $0xd0] ss:$8 sps:$4 sm:$0xff]  }
 0x217   :  { %v4442_v44 = vpop.f32.mrb[8].mxu0 }
 0x218   :  { %v4443_v48 = vpop.f32.mrb[9].mxu0 }
 0x219   :  { %v4444_v46 = vadd.f32 %v4443_v48, %v4442_v44  ;;  %3078 = vmatpush1.bf16.msra.mxu1 %v5106_v42  ;;  %4553 = vmatpush3.bf16.msra.mxu0 %v5113_v20  ;;  %v4445_v49 = vpop.f32.mrb[10].mxu0  ;;  %v5183_v42 = vld [vmem:[#allocation6 + $0xe4] ss:$8 sps:$4 sm:$0xff]   ;;  %v5181_v20 = vld [vmem:[#allocation6 + $0xe0] ss:$8 sps:$4 sm:$0xff]  }
 0x21a   :  { %3079 = vmatprep.subr.bf16.mxu1 %v5112_v43  ;;  %4554 = vmatprep.subr.bf16.mxu0 %v5315_v63  ;;  %v4446_v51 = vpop.f32.mrb[11].mxu0  ;;  %v5186_v43 = vld [vmem:[#allocation6 + $0xf4] ss:$8 sps:$4 sm:$0xff]   ;;  %v5184_v44 = vld [vmem:[#allocation6 + $0xf0] ss:$8 sps:$4 sm:$0xff]  }
 0x21b   :  { %v2136_v52 = vadd.f32 %v4444_v46, %v5505_v16  ;;  %v5150_v16 = vld [vmem:[#allocation6 + $0x34] ss:$8 sps:$4 sm:$0xff]   ;;  %v5189_v48 = vld [vmem:[#allocation6 + $0x104] ss:$8 sps:$4 sm:$0xff]  }
 0x21c   :  { %v5211_v51 = vld [vmem:[%s5634_s7 + $0x40] sm:$0xff]  }
 0x21d   :  { %v2176_v53 = vadd.f32 %v2175_v21, %v2136_v52  ;;  %3080 = vmatpush1.bf16.msra.mxu1 %v5110_v47  ;;  %4555 = vmatpush3.bf16.msra.mxu0 %v5117_v32  ;;  %v5151_v21 = vld [vmem:[#allocation6 + $0x40] ss:$8 sps:$4 sm:$0xff]   ;;  %v5212_v52 = vld [vmem:[%s5634_s7] sm:$0xff]  }
 0x21e   :  { %3090 = vmatprep.subr.bf16.mxu1 %v5116_v50  ;;  %3557 = vmatprep.subr.bf16.mxu0 %v5141_v11 }
 0x21f   :  { %v2185_v56 = vmax.f32 %v2176_v53, 0.0  ;;  %v5213_v53 = vld [vmem:[%s5634_s7 + $0x48] sm:$0xff]  }
 0x220   :  { %3082 = vmatmul.mubr.bf16.vlgmr.msra.gmra.mrb[12].mxu1 %v5507_v18  ;;  %v5148_v18 = vld [vmem:[#allocation6 + $0x30] ss:$8 sps:$4 sm:$0xff]  }
 0x221   :  { %v2190_v57 = vpack.c.bf16 %v2185_v56, %v2185_v56  ;;  %3091 = vmatpush1.bf16.msra.mxu1 %v5114_v54  ;;  %3122 = vmatprep.mubr.bf16.mxu1 %v5314_v25  ;;  %v5214_v54 = vld [vmem:[%s5634_s7 + $0x8] sm:$0xff]   ;;  %v5216_v56 = vld [vmem:[%s5634_s7 + $0x10] sm:$0xff]  }
 0x222   :  { %3092 = vmatprep.subr.bf16.mxu1 %v5120_v55  ;;  %v5215_v55 = vld [vmem:[%s5634_s7 + $0x50] sm:$0xff]  }
 0x223   :  { %4557 = vmatmul.mubr.bf16.vlgmr.msra.gmra.mrb[20].mxu0 %v2190_v57 }
 0x224   :  { %3558 = vmatpush1.bf16.msra.mxu0 %v5139_v17 }
 0x225   :  { %3093 = vmatpush1.bf16.msra.mxu1 %v5118_v58  ;;  %3559 = vmatprep.subr.bf16.mxu0 %v5144_v13  ;;  %v5218_v58 = vld [vmem:[%s5634_s7 + $0x18] sm:$0xff]  }
 0x226   :  { %3094 = vmatprep.subr.bf16.mxu1 %v5123_v59  ;;  %v5219_v59 = vld [vmem:[%s5634_s7 + $0x60] sm:$0xff]  }
 0x228   :  { %3560 = vmatpush1.bf16.msra.mxu0 %v5142_v14 }
 0x229   :  { %3095 = vmatpush1.bf16.msra.mxu1 %v5121_v60  ;;  %3561 = vmatprep.subr.bf16.mxu0 %v5147_v3  ;;  %v5220_v60 = vld [vmem:[%s5634_s7 + $0x20] sm:$0xff]  }
 0x22a   :  { %3096 = vmatprep.subr.bf16.mxu1 %v5126_v61  ;;  %v5221_v61 = vld [vmem:[%s5634_s7 + $0x68] sm:$0xff]  }
 0x22c   :  { %3562 = vmatpush1.bf16.msra.mxu0 %v5145_v15 }
 0x22d   :  { %3097 = vmatpush1.bf16.msra.mxu1 %v5124_v62  ;;  %3563 = vmatprep.subr.bf16.mxu0 %v5150_v16  ;;  %v2351_v62 = vld [vmem:[%s5631_s4] sm:$0x7] }
 0x22e   :  { %3098 = vmatprep.subr.bf16.mxu1 %v5129_v0  ;;  %v5222_v0 = vld [vmem:[%s5634_s7 + $0x28] sm:$0xff]   ;;  %v2356_v16 = vrot.slane %v2351_v62, %v5480_v2 }
 0x230   :  { %3564 = vmatpush1.bf16.msra.mxu0 %v5148_v18  ;;  %v2360_v18 = vrot.slane %v2351_v62, %v5488_v4 }
 0x231   :  { %3099 = vmatpush1.bf16.msra.mxu1 %v5127_v6  ;;  %3565 = vmatprep.subr.bf16.mxu0 %v5153_v19  ;;  %v2364_v6 = vrot.slane %v2351_v62, %v400_v45 }
 0x232   :  { %3100 = vmatprep.subr.bf16.mxu1 %v5132_v5 }
 0x234   :  { %3566 = vmatpush1.bf16.msra.mxu0 %v5151_v21 }
 0x235   :  { %3101 = vmatpush1.bf16.msra.mxu1 %v5130_v7  ;;  %3567 = vmatprep.subr.bf16.mxu0 %v5156_v22 }
 0x236   :  { %3102 = vmatprep.subr.bf16.mxu1 %v5135_v8 }
 0x238   :  { %3568 = vmatpush1.bf16.msra.mxu0 %v5154_v23 }
 0x239   :  { %3103 = vmatpush1.bf16.msra.mxu1 %v5133_v12  ;;  %3569 = vmatprep.subr.bf16.mxu0 %v5159_v24 }
 0x23a   :  { %3104 = vmatprep.subr.bf16.mxu1 %v5138_v9 }
 0x23c   :  { %3570 = vmatpush1.bf16.msra.mxu0 %v5157_v26 }
 0x23d   :  { %3105 = vmatpush1.bf16.msra.mxu1 %v5136_v10  ;;  %3571 = vmatprep.subr.bf16.mxu0 %v5162_v27 }
 0x23e   :  { %4503 = vmatprep.subr.bf16.mxu1 %v5211_v51 }
 0x240   :  { %3123 = vmatmul.mubr.bf16.vlgmr.msra.gmra.mrb[12].mxu1 %v2190_v57  ;;  %3572 = vmatpush1.bf16.msra.mxu0 %v5160_v28  ;;  %v5217_v57 = vld [vmem:[%s5634_s7 + $0x58] sm:$0xff]   ;;  %v5187_v28 = vld [vmem:[#allocation6 + $0x100] ss:$8 sps:$4 sm:$0xff]  }
 0x241   :  { %3573 = vmatprep.subr.bf16.mxu0 %v5165_v29  ;;  %4504 = vmatpush3.bf16.msra.mxu1 %v5212_v52 }
 0x242   :  { %4505 = vmatprep.subr.bf16.mxu1 %v5213_v53 }
 0x244   :  { %3574 = vmatpush1.bf16.msra.mxu0 %v5163_v30  ;;  %v5192_v30 = vld [vmem:[#allocation6 + $0x114] ss:$8 sps:$4 sm:$0xff]  }
 0x245   :  { %3575 = vmatprep.subr.bf16.mxu0 %v5168_v31  ;;  %4506 = vmatpush3.bf16.msra.mxu1 %v5214_v54  ;;  %v5190_v31 = vld [vmem:[#allocation6 + $0x110] ss:$8 sps:$4 sm:$0xff]  }
 0x246   :  { %4507 = vmatprep.subr.bf16.mxu1 %v5215_v55 }
 0x248   :  { %3576 = vmatpush1.bf16.msra.mxu0 %v5166_v33  ;;  %v5195_v33 = vld [vmem:[#allocation6 + $0x124] ss:$8 sps:$4 sm:$0xff]  }
 0x249   :  { %3577 = vmatprep.subr.bf16.mxu0 %v5171_v34  ;;  %4508 = vmatpush3.bf16.msra.mxu1 %v5216_v56  ;;  %v5193_v34 = vld [vmem:[#allocation6 + $0x120] ss:$8 sps:$4 sm:$0xff]  }
 0x24a   :  { %4509 = vmatprep.subr.bf16.mxu1 %v5217_v57 }
 0x24c   :  { %3578 = vmatpush1.bf16.msra.mxu0 %v5169_v35  ;;  %v5198_v35 = vld [vmem:[#allocation6 + $0x134] ss:$8 sps:$4 sm:$0xff]  }
 0x24d   :  { %3579 = vmatprep.subr.bf16.mxu0 %v5174_v36  ;;  %4510 = vmatpush3.bf16.msra.mxu1 %v5218_v58  ;;  %v5196_v36 = vld [vmem:[#allocation6 + $0x130] ss:$8 sps:$4 sm:$0xff]  }
 0x24e   :  { %4511 = vmatprep.subr.bf16.mxu1 %v5219_v59 }
 0x250   :  { %3580 = vmatpush1.bf16.msra.mxu0 %v5172_v37  ;;  %v5201_v37 = vld [vmem:[#allocation6 + $0x144] ss:$8 sps:$4 sm:$0xff]  }
 0x251   :  { %3581 = vmatprep.subr.bf16.mxu0 %v5177_v38  ;;  %4512 = vmatpush3.bf16.msra.mxu1 %v5220_v60  ;;  %v5199_v38 = vld [vmem:[#allocation6 + $0x140] ss:$8 sps:$4 sm:$0xff]  }
 0x252   :  { %4513 = vmatprep.subr.bf16.mxu1 %v5221_v61  ;;  %v5227_v61 = vld [vmem:[%s5636_s9] sm:$0xff]  }
 0x254   :  { %3582 = vmatpush1.bf16.msra.mxu0 %v5175_v39  ;;  %v5204_v39 = vld [vmem:[#allocation6 + $0x154] ss:$8 sps:$4 sm:$0xff]  }
 0x255   :  { %3583 = vmatprep.subr.bf16.mxu0 %v5180_v40  ;;  %4514 = vmatpush3.bf16.msra.mxu1 %v5222_v0  ;;  %v5202_v40 = vld [vmem:[#allocation6 + $0x150] ss:$8 sps:$4 sm:$0xff]  }
 0x256   :  { %v5230_v0 = vld [vmem:[%s5636_s9 + $0x18] sm:$0xff]  }
 0x258   :  { %3584 = vmatpush1.bf16.msra.mxu0 %v5178_v41  ;;  %v5207_v41 = vld [vmem:[#allocation6 + $0x164] ss:$8 sps:$4 sm:$0xff]  }
 0x259   :  { %3585 = vmatprep.subr.bf16.mxu0 %v5183_v42  ;;  %v5210_v42 = vld [vmem:[#allocation6 + $0x174] ss:$8 sps:$4 sm:$0xff]  }
 0x25c   :  { %3586 = vmatpush1.bf16.msra.mxu0 %v5181_v20  ;;  %v5208_v20 = vld [vmem:[#allocation6 + $0x170] ss:$8 sps:$4 sm:$0xff]  }
 0x25d   :  { %3587 = vmatprep.subr.bf16.mxu0 %v5186_v43 }
 0x260   :  { %3588 = vmatpush1.bf16.msra.mxu0 %v5184_v44 }
 0x261   :  { %3598 = vmatprep.subr.bf16.mxu0 %v5189_v48  ;;  %v5223_v48 = vld [vmem:[%s5634_s7 + $0x70] sm:$0xff]  }
 0x262   :  { %4515 = vmatprep.subr.bf16.mxu1 %v5223_v48 }
 0x2b3   :  { %v4466_v46 = vpop.f32.mrb[12].mxu0 }
 0x2b4   :  { %v4467_v47 = vpop.f32.mrb[13].mxu0 }
 0x2b5   :  { %v4468_v32 = vadd.f32 %v4467_v47, %v4466_v46  ;;  %v4469_v49 = vpop.f32.mrb[14].mxu0  ;;  %v5224_v46 = vld [vmem:[%s5634_s7 + $0x30] sm:$0xff]   ;;  %v5225_v47 = vld [vmem:[%s5634_s7 + $0x78] sm:$0xff]  }
 0x2b6   :  { %v4470_v50 = vpop.f32.mrb[15].mxu0  ;;  %4516 = vmatpush3.bf16.msra.mxu1 %v5224_v46  ;;  %v3305_v49 = vld [vmem:[%s5633_s6] sm:$0x3] }
 0x2b7   :  { %v3166_v8 = vadd.f32 %v4468_v32, %v2364_v6  ;;  %v5226_v32 = vld [vmem:[%s5634_s7 + $0x38] sm:$0xff]   ;;  %4517 = vmatprep.subr.bf16.mxu1 %v5225_v47  ;;  %v3310_v50 = vrot.slane %v3305_v49, %v5480_v2  ;;  %v3314_v51 = vrot.slane %v3305_v49, %v5488_v4  ;;  %v5228_v2 = vld [vmem:[%s5636_s9 + $0x8] sm:$0xff]   ;;  %v5229_v4 = vld [vmem:[%s5636_s9 + $0x10] sm:$0xff]  }
 0x2b8   :  { %v5231_v6 = vld [vmem:[%s5636_s9 + $0x20] sm:$0xff]  }
 0x2ba   :  { %4518 = vmatpush3.bf16.msra.mxu1 %v5226_v32 }
 0x2bb   :  { %4560 = vmatprep.subr.bf16.mxu1 %v5315_v63 }
 0x2d3   :  { %v4488_v5 = vpop.f32.mrb[16].mxu0 }
 0x2d4   :  { %v4489_v7 = vpop.f32.mrb[17].mxu0 }
 0x2d5   :  { %v4490_v12 = vadd.f32 %v4489_v7, %v4488_v5  ;;  %v4491_v9 = vpop.f32.mrb[18].mxu0  ;;  %v5232_v5 = vld [vmem:[%s5636_s9 + $0x28] sm:$0xff]   ;;  %v5233_v7 = vld [vmem:[%s5636_s9 + $0x30] sm:$0xff]  }
 0x2d6   :  { %v4492_v10 = vpop.f32.mrb[19].mxu0  ;;  %v4356_v9 = vld [vmem:[%s5635_s8] ss:$0 sm:$0xff] }
 0x2d7   :  { %v3206_v17 = vadd.f32 %v4490_v12, %v3166_v8  ;;  %v5234_v8 = vld [vmem:[%s5636_s9 + $0x38] sm:$0xff]  }
 0x2f6   :  { %v3245_v11 = vpop.f32.mrb[20].mxu0 }
 0x2f7   :  { %v3246_v13 = vadd.f32 %v3245_v11, %v3206_v17  ;;  %v4558_v14 = vpop.f32.mrb[21].mxu0 }
 0x2f8   :  { %v3248_v3 = vpop.f32.mrb[22].mxu0 }
 0x2f9   :  { %v4559_v15 = vpop.f32.mrb[23].mxu0  ;;  %v3253_v43 = vmax.f32 %v3246_v13, 0.0 }
 0x2fb   :  { %v3256_v44 = vpack.c.bf16 %v3253_v43, %v3253_v43 }
 0x313   :  { %v3124_v19 = vpop.f32.mrb[12].mxu1 }
 0x314   :  { %v4584_v1 = vadd.f32 %v3124_v19, %v2356_v16  ;;  %v3126_v45 = vpop.f32.mrb[13].mxu1 }
 0x315   :  { %v4585_v21 = vadd.f32 %v3126_v45, %v2360_v18  ;;  %v3128_v22 = vpop.f32.mrb[14].mxu1 }
 0x316   :  { %v3251_v23 = vmax.f32 %v4584_v1, 0.0  ;;  %v3129_v24 = vpop.f32.mrb[15].mxu1 }
 0x317   :  { %v3252_v26 = vmax.f32 %v4585_v21, 0.0 }
 0x318   :  { %v3254_v29 = vpack.c.bf16 %v3251_v23, %v3251_v23 }
 0x319   :  { %v3255_v27 = vpack.c.bf16 %v3252_v26, %v3252_v26 }
 0x31b   :  { %3589 = vmatprep.mubr.bf16.mxu0 %v3255_v27 }
 0x31c   :  { %3590 = vmatmul.mubr.bf16.vlgmr.msra.gmra.mrb[24].mxu0 %v3254_v29 }
 0x31d   :  { %3599 = vmatpush1.bf16.msra.mxu0 %v5187_v28  ;;  %3630 = vmatprep.mubr.bf16.mxu0 %v5314_v25  ;;  %v5205_v25 = vld [vmem:[#allocation6 + $0x160] ss:$8 sps:$4 sm:$0xff]  }
 0x31e   :  { %3600 = vmatprep.subr.bf16.mxu0 %v5192_v30 }
 0x321   :  { %3601 = vmatpush1.bf16.msra.mxu0 %v5190_v31 }
 0x322   :  { %3602 = vmatprep.subr.bf16.mxu0 %v5195_v33 }
 0x325   :  { %3603 = vmatpush1.bf16.msra.mxu0 %v5193_v34 }
 0x326   :  { %3604 = vmatprep.subr.bf16.mxu0 %v5198_v35 }
 0x329   :  { %3605 = vmatpush1.bf16.msra.mxu0 %v5196_v36 }
 0x32a   :  { %3606 = vmatprep.subr.bf16.mxu0 %v5201_v37 }
 0x32d   :  { %3607 = vmatpush1.bf16.msra.mxu0 %v5199_v38 }
 0x32e   :  { %3608 = vmatprep.subr.bf16.mxu0 %v5204_v39 }
 0x331   :  { %3609 = vmatpush1.bf16.msra.mxu0 %v5202_v40 }
 0x332   :  { %3610 = vmatprep.subr.bf16.mxu0 %v5207_v41 }
 0x335   :  { %3611 = vmatpush1.bf16.msra.mxu0 %v5205_v25 }
 0x336   :  { %3612 = vmatprep.subr.bf16.mxu0 %v5210_v42 }
 0x339   :  { %3613 = vmatpush1.bf16.msra.mxu0 %v5208_v20 }
 0x33c   :  { %3631 = vmatmul.mubr.bf16.vlgmr.msra.gmra.mrb[24].mxu0 %v3256_v44 }
 0x40f   :  { %v3632_v52 = vpop.f32.mrb[24].mxu0 }
 0x410   :  { %v4586_v53 = vadd.f32 %v3632_v52, %v3310_v50  ;;  %v3634_v54 = vpop.f32.mrb[25].mxu0 }
 0x411   :  { %v4587_v55 = vadd.f32 %v3634_v54, %v3314_v51  ;;  %v3636_v56 = vpop.f32.mrb[26].mxu0 }
 0x412   :  { %v3639_v57 = vmax.f32 %v4586_v53, 0.0  ;;  %v3637_v58 = vpop.f32.mrb[27].mxu0 }
 0x413   :  { %v3640_v59 = vmax.f32 %v4587_v55, 0.0 }
 0x414   :  { %v3641_v62 = vpack.c.bf16 %v3639_v57, %v3639_v57 }
 0x415   :  { %v3642_v60 = vpack.c.bf16 %v3640_v59, %v3640_v59 }
 0x417   :  { %3810 = vmatprep.mubr.bf16.mxu1 %v3642_v60 }
 0x418   :  { %3811 = vmatmul.mubr.bf16.vlgmr.msra.gmra.mrb[16].mxu1 %v3641_v62 }
 0x419   :  { %4561 = vmatpush3.bf16.msra.mxu1 %v5227_v61  ;;  %4576 = vmatprep.mubr.msk.bf16.mxu1 %vm5316_vm1, %v5315_v63 }
 0x41a   :  { %4562 = vmatprep.subr.bf16.mxu1 %v5315_v63 }
 0x41d   :  { %4563 = vmatpush3.bf16.msra.mxu1 %v5228_v2 }
 0x41e   :  { %4564 = vmatprep.subr.bf16.mxu1 %v5315_v63 }
 0x421   :  { %4565 = vmatpush3.bf16.msra.mxu1 %v5229_v4 }
 0x422   :  { %4566 = vmatprep.subr.bf16.mxu1 %v5315_v63 }
 0x425   :  { %4567 = vmatpush3.bf16.msra.mxu1 %v5230_v0 }
 0x426   :  { %4568 = vmatprep.subr.bf16.mxu1 %v5315_v63 }
 0x429   :  { %4569 = vmatpush3.bf16.msra.mxu1 %v5231_v6 }
 0x42a   :  { %4570 = vmatprep.subr.bf16.mxu1 %v5315_v63 }
 0x42d   :  { %4571 = vmatpush3.bf16.msra.mxu1 %v5232_v5 }
 0x42e   :  { %4572 = vmatprep.subr.bf16.mxu1 %v5315_v63 }
 0x431   :  { %4573 = vmatpush3.bf16.msra.mxu1 %v5233_v7 }
 0x432   :  { %4574 = vmatprep.subr.bf16.mxu1 %v5315_v63  ;;  %v4373_v63 = vld [vmem:[%s5637_s10] ss:$0 sm:$0xff] }
 0x435   :  { %4575 = vmatpush3.bf16.msra.mxu1 %v5234_v8 }
 0x4eb   :  { %v4519_v12 = vpop.f32.mrb[16].mxu1 }
 0x4ec   :  { %v4520_v10 = vpop.f32.mrb[17].mxu1 }
 0x4ed   :  { %v4521_v17 = vadd.f32 %v4520_v10, %v4519_v12  ;;  %v4522_v11 = vpop.f32.mrb[18].mxu1 }
 0x4ee   :  { %v4523_v13 = vpop.f32.mrb[19].mxu1 }
 0x4ef   :  { %v3813_v14 = vadd.f32 %v4521_v17, %v4356_v9 }
 0x4f1   :  { %v3818_v3 = vmax.f32 %v3813_v14, 0.0 }
 0x4f3   :  { %v3819_v15 = vpack.c.bf16 %v3818_v3, %v3818_v3 }
 0x4f5   :  { %4577 = vmatmul.mubr.bf16.vlgmr.msra.gmra.mrb[20].mxu1 %v3819_v15 }
 0x5c8   :  { %v3925_v16 = vpop.f32.mrb[20].mxu1 }
 0x5c9   :  { %v3926_v18 = vadd.f32 %v4373_v63, %v3925_v16  ;;  %v4578_v19 = vpop.f32.mrb[21].mxu1 }
 0x5ca   :  { %v3928_v1 = vpop.f32.mrb[22].mxu1 }
 0x5cb   :  { %v3931_v45 = vmax.f32 %v3926_v18, 0.0  ;;  %v4579_v21 = vpop.f32.mrb[23].mxu1 }
 0x5cd   :  { %v3932_v22 = vpack.c.bf16 %v3931_v45, %v3931_v45 }
 0x5cf   :  { %3933 = vst [vmem:[%s5638_s11] sm:$0xf] %v3932_v22 }
 0x5d0   :  { %3938 = vsyncpa [#allocation3], 1 }
 0x5d1   :  { %3939 = vsyncpa [#allocation5], 1 }

</bundles_post_ra>
